<compile_context>
chip_gen: v5e
topology: v5e:2x2
jax: 0.10.0
libtpu: 0.0.40
codegen_flags: <defaults>
</compile_context>

<pallas_src>
import jax
import jax.numpy as jnp
from jax import lax
from jax.experimental import pallas as pl
from jax.experimental.pallas import tpu as pltpu

# ---- hyper-parameters of CP_ClDiceLoss(__init__ defaults) -------------------
SMOOTH = 1.0
EXPONENT = 2           # only used as pow(2) below
LOSS_WEIGHT = 0.5
IGNORE_INDEX = 255
CLDICE_ITERS = 3
EPS = 1e-6

_NUM_PARTIALS = 8      # per-batch partial sums emitted by the kernel
_LANES = 128           # lane-dense output block width


# ---- roll helpers (same math used by kernel and pure-JAX reference) ---------
def _roll_kernel(x, shift, axis):
    return pltpu.roll(x, shift, axis)


def _roll_jax(x, shift, axis):
    return jnp.roll(x, shift, axis=axis)


# ---- soft morphology with hoisted OOB masks ---------------------------------
def _make_soft_skel(shape, roll_fn):
    """Builds soft_skel for 2-D (H, W) images.

    OOB masks are computed ONCE here and closed over (instead of re-emitting
    iota+compare per neighbour call), and the erode shared between one
    iteration's `soft_erode(img)` and the previous iteration's `soft_open`
    is computed only once (7 -> 4 erodes per skeleton, exact same math).
    """
    h, w = shape
    ih = lax.broadcasted_iota(jnp.int32, shape, 0)
    iw = lax.broadcasted_iota(jnp.int32, shape, 1)
    oob = {
        (0, -1): ih < 1,            # neighbour above row 0
        (0, +1): ih >= h - 1,       # neighbour below last row
        (1, -1): iw < 1,            # neighbour left of col 0
        (1, +1): iw >= w - 1,       # neighbour right of last col
    }
    pos_inf = jnp.float32(jnp.inf)
    neg_inf = jnp.float32(-jnp.inf)

    def nb(x, axis, delta, fill):
        # y[i] = x[i + delta]; out-of-range positions -> fill
        y = roll_fn(x, (-delta) % shape[axis], axis)
        return jnp.where(oob[(axis, delta)], fill, y)

    def erode(img):
        # torch: min(MaxPool(3,1)(-img)*-1, MaxPool(1,3)(-img)*-1) (+inf pad)
        v = jnp.minimum(jnp.minimum(nb(img, 0, -1, pos_inf), img),
                        nb(img, 0, +1, pos_inf))
        hh = jnp.minimum(jnp.minimum(nb(img, 1, -1, pos_inf), img),
                         nb(img, 1, +1, pos_inf))
        return jnp.minimum(v, hh)

    def dilate(img):
        # torch: MaxPool2d(3, stride=1, padding=1) — separable max, -inf pad
        hh = jnp.maximum(jnp.maximum(nb(img, 1, -1, neg_inf), img),
                         nb(img, 1, +1, neg_inf))
        return jnp.maximum(jnp.maximum(nb(hh, 0, -1, neg_inf), hh),
                           nb(hh, 0, +1, neg_inf))

    def skel(img, iters):
        # Equivalent to the PyTorch soft_skel, but each erode(img_j) is
        # computed once and reused both as soft_open's erode and as the next
        # iteration's `img = soft_erode(img)`.
        eroded = erode(img)                                   # e_1
        s = jnp.maximum(img - dilate(eroded), 0.0)            # relu(img - open)
        for _ in range(iters):
            img = eroded                                      # img_j
            eroded = erode(img)                               # e_{j+1}
            delta = jnp.maximum(img - dilate(eroded), 0.0)    # relu(img_j - open)
            s = s + jnp.maximum(delta - s * delta, 0.0)
        return s

    return skel


# ---- per-batch partial sums (shared by kernel & reference) ------------------
def _per_batch_partials(logits, target, roll_fn):
    """logits: (C, H, W) f32; target: (H, W) int32.

    Returns 8 scalars:
      (dice_num, dice_den, log_sum, haus_sq, cl_pt, cl_ps, cl_tp, cl_ts)
    """
    c, h, w = logits.shape

    # ---- softmax over channels -> class-1 probability ----
    chans = [logits[i] for i in range(c)]
    m = chans[0]
    for ch in chans[1:]:
        m = jnp.maximum(m, ch)
    exps = [jnp.exp(ch - m) for ch in chans]
    denom = exps[0]
    for e in exps[1:]:
        denom = denom + e
    p1 = exps[1] / denom                                   # (H, W)

    tcl = jnp.clip(target, 0, c - 1)
    t1 = (tcl == 1).astype(jnp.float32)                    # one_hot(target)[..., 1]
    vm = (target != IGNORE_INDEX).astype(jnp.float32)      # valid_mask

    # ---- binary dice partials for class 1 ----
    dice_num = jnp.sum(p1 * t1 * vm)
    dice_den = jnp.sum(p1 * p1 + t1)                       # t1^2 == t1 (binary)

    # ---- log-term partial: sum((1 - t) * log(1 - p + 1e-6)) ----
    log_sum = jnp.sum((1.0 - t1) * jnp.log(1.0 - p1 + EPS))

    # ---- "hausdorff" row-set distance, squared, via MXU Gram matmul ----
    # d2[i, j] = ||a_i||^2 + ||b_j||^2 - 2 * <a_i, b_j>,   a = p1 rows, b = t1 rows
    a_bf = p1.astype(jnp.bfloat16)
    b_bf = t1.astype(jnp.bfloat16)                         # 0/1 exact in bf16
    gram = jnp.einsum("iw,jw->ij", a_bf, b_bf,
                      preferred_element_type=jnp.float32)  # (H, H) on the MXU
    a_r = a_bf.astype(jnp.float32)
    a2 = jnp.sum(a_r * a_r, axis=1, keepdims=True)         # (H, 1)
    ones_row = jnp.ones((1, w), jnp.bfloat16)
    b2 = jnp.einsum("ow,jw->oj", ones_row, b_bf,
                    preferred_element_type=jnp.float32)    # (1, H), exact row sums
    d2 = jnp.maximum(a2 + b2 - 2.0 * gram, 0.0)            # clamp fp cancellation
    m_ab = jnp.max(jnp.min(d2, axis=1, keepdims=True))     # p1-rows -> t1-rows
    m_ba = jnp.max(jnp.min(d2, axis=0, keepdims=True))     # t1-rows -> p1-rows
    haus_sq = jnp.maximum(m_ab, m_ba)                      # sqrt deferred to wrapper

    # ---- soft clDice partials ----
    skel = _make_soft_skel((h, w), roll_fn)                # masks hoisted once
    skel_pred = skel(p1, CLDICE_ITERS)
    skel_true = skel(t1, CLDICE_ITERS)
    cl_pt = jnp.sum(skel_pred * t1)
    cl_ps = jnp.sum(skel_pred)
    cl_tp = jnp.sum(skel_true * p1)
    cl_ts = jnp.sum(skel_true)

    return (dice_num, dice_den, log_sum, haus_sq, cl_pt, cl_ps, cl_tp, cl_ts)


# ---- combine per-batch partials into the scalar loss (runs in plain JAX) ----
def _combine(partials, n, h, w):
    num, den, logs, hq = (partials[:, 0], partials[:, 1],
                          partials[:, 2], partials[:, 3])
    cl_pt, cl_ps, cl_tp, cl_ts = (partials[:, 4], partials[:, 5],
                                  partials[:, 6], partials[:, 7])

    bd = jnp.mean(1.0 - (2.0 * num + SMOOTH) / (den + SMOOTH))
    dh = jnp.sqrt(jnp.max(hq))                      # sqrt only the final scalar
    log_term = -jnp.sum(logs) / (n * h * w)
    dice_total = bd + dh + log_term

    tprec = (jnp.sum(cl_pt) + SMOOTH) / (jnp.sum(cl_ps) + SMOOTH)
    tsens = (jnp.sum(cl_tp) + SMOOTH) / (jnp.sum(cl_ts) + SMOOTH)
    cl_dice = 1.0 - 2.0 * (tprec * tsens) / (tprec + tsens)

    # TODO(synk): `if loss < 0: print(loss)` host-side debug print is omitted.
    return (1.0 - LOSS_WEIGHT) * dice_total + LOSS_WEIGHT * cl_dice


# ---- Pallas kernel (one batch element per grid step) -------------------------
def _cp_cldice_kernel(pred_ref, target_ref, out_ref):
    # pred_ref: (1, C, H, W), target_ref: (1, H, W), out_ref: (1, 8, 128)
    vals = _per_batch_partials(pred_ref[0], target_ref[0], _roll_kernel)
    # Pack the 8 scalars into a lane-dense (8, 128) block (single unmasked vst).
    row = lax.broadcasted_iota(jnp.int32, (_NUM_PARTIALS, _LANES), 0)
    block = jnp.zeros((_NUM_PARTIALS, _LANES), jnp.float32)
    for k, v in enumerate(vals):
        block = jnp.where(row == k, v, block)
    out_ref[0] = block


@jax.jit
def cp_cldice_loss(pred, target):
    """pred: (N, C, H, W) float logits; target: (N, H, W) int labels."""
    pred = pred.astype(jnp.float32)
    target = target.astype(jnp.int32)
    n, c, h, w = pred.shape

    partials_raw = pl.pallas_call(
        _cp_cldice_kernel,
        out_shape=jax.ShapeDtypeStruct((n, _NUM_PARTIALS, _LANES), jnp.float32),
        grid=(n,),
        in_specs=[
            pl.BlockSpec((1, c, h, w), lambda b: (b, 0, 0, 0)),
            pl.BlockSpec((1, h, w), lambda b: (b, 0, 0)),
        ],
        out_specs=pl.BlockSpec((1, _NUM_PARTIALS, _LANES), lambda b: (b, 0, 0)),
        compiler_params=pltpu.CompilerParams(
            dimension_semantics=("parallel",),
            vmem_limit_bytes=32 * 1024 * 1024,
        ),
    )(pred, target)

    partials = partials_raw[:, :, 0]          # (N, 8)
    return _combine(partials, n, h, w)


@jax.jit
def cp_cldice_loss_reference(pred, target):
    """Pure-JAX reference of the same forward pass (no Pallas)."""
    pred = pred.astype(jnp.float32)
    target = target.astype(jnp.int32)
    n, c, h, w = pred.shape
    rows = []
    for b in range(n):
        rows.append(jnp.stack(_per_batch_partials(pred[b], target[b], _roll_jax)))
    partials = jnp.stack(rows)                # (N, 8)
    return _combine(partials, n, h, w)


if __name__ == "__main__":
    key = jax.random.PRNGKey(0)
    k1, k2 = jax.random.split(key)

    N, C, H, W = 2, 4, 16, 16
    pred = jax.random.normal(k1, (N, C, H, W), dtype=jnp.float32)
    target = jax.random.randint(k2, (N, H, W), 0, C).astype(jnp.int32)
    # sprinkle a few ignore_index pixels to exercise valid_mask / clamp paths
    target = target.at[0, 0, 0:3].set(IGNORE_INDEX)
    target = target.at[1, 5, 7].set(IGNORE_INDEX)

    loss = jax.block_until_ready(cp_cldice_loss(pred, target))
    ref = jax.block_until_ready(cp_cldice_loss_reference(pred, target))

    assert bool(jnp.isfinite(loss)), ("non-finite loss", float(loss))
    assert abs(float(loss) - float(ref)) <= 1e-2 + 1e-2 * abs(float(ref)), (
        float(loss), float(ref))

    print("KERNEL_OK")
</pallas_src>

<mosaic_0001>
module attributes {stable_mosaic.version = 11 : i64} {
  func.func @_cp_cldice_kernel(%arg0: i32, %arg1: memref<1x4x16x16xf32, #tpu.memory_space<vmem>>, %arg2: memref<1x16x16xi32, #tpu.memory_space<vmem>>, %arg3: memref<1x8x128xf32, #tpu.memory_space<vmem>>) attributes {dimension_semantics = [#tpu.dimension_semantics<parallel>], iteration_bounds = array<i64: 2>, scalar_prefetch = 0 : i64, scratch_operands = 0 : i64, tpu.core_type = #tpu.core_type<tc>, window_params = [{transform_indices = @transform_0, window_bounds = array<i64: 1, 4, 16, 16>}, {transform_indices = @transform_1, window_bounds = array<i64: 1, 16, 16>}, {transform_indices = @transform_2, window_bounds = array<i64: 1, 8, 128>}]} {
    %c0 = arith.constant 0 : index
    %c0_0 = arith.constant 0 : index
    %c0_1 = arith.constant 0 : index
    %c0_2 = arith.constant 0 : index
    %0 = vector.load %arg1[%c0, %c0_0, %c0_1, %c0_2] : memref<1x4x16x16xf32, #tpu.memory_space<vmem>>, vector<1x4x16x16xf32>
    %1 = vector.shape_cast %0 : vector<1x4x16x16xf32> to vector<4x16x16xf32>
    %c0_3 = arith.constant 0 : index
    %c0_4 = arith.constant 0 : index
    %c0_5 = arith.constant 0 : index
    %2 = vector.load %arg2[%c0_3, %c0_4, %c0_5] : memref<1x16x16xi32, #tpu.memory_space<vmem>>, vector<1x16x16xi32>
    %3 = vector.shape_cast %2 : vector<1x16x16xi32> to vector<16x16xi32>
    %4 = vector.extract_strided_slice %1 {offsets = [0, 0, 0], sizes = [1, 16, 16], strides = [1, 1, 1]} : vector<4x16x16xf32> to vector<1x16x16xf32>
    %5 = vector.shape_cast %4 : vector<1x16x16xf32> to vector<16x16xf32>
    %6 = vector.extract_strided_slice %1 {offsets = [1, 0, 0], sizes = [1, 16, 16], strides = [1, 1, 1]} : vector<4x16x16xf32> to vector<1x16x16xf32>
    %7 = vector.shape_cast %6 : vector<1x16x16xf32> to vector<16x16xf32>
    %8 = vector.extract_strided_slice %1 {offsets = [2, 0, 0], sizes = [1, 16, 16], strides = [1, 1, 1]} : vector<4x16x16xf32> to vector<1x16x16xf32>
    %9 = vector.shape_cast %8 : vector<1x16x16xf32> to vector<16x16xf32>
    %10 = vector.extract_strided_slice %1 {offsets = [3, 0, 0], sizes = [1, 16, 16], strides = [1, 1, 1]} : vector<4x16x16xf32> to vector<1x16x16xf32>
    %11 = vector.shape_cast %10 : vector<1x16x16xf32> to vector<16x16xf32>
    %12 = arith.maximumf %5, %7 : vector<16x16xf32>
    %13 = arith.maximumf %12, %9 : vector<16x16xf32>
    %14 = arith.maximumf %13, %11 : vector<16x16xf32>
    %15 = arith.subf %5, %14 : vector<16x16xf32>
    %16 = math.exp %15 : vector<16x16xf32>
    %17 = arith.subf %7, %14 : vector<16x16xf32>
    %18 = math.exp %17 : vector<16x16xf32>
    %19 = arith.subf %9, %14 : vector<16x16xf32>
    %20 = math.exp %19 : vector<16x16xf32>
    %21 = arith.subf %11, %14 : vector<16x16xf32>
    %22 = math.exp %21 : vector<16x16xf32>
    %23 = arith.addf %16, %18 : vector<16x16xf32>
    %24 = arith.addf %23, %20 : vector<16x16xf32>
    %25 = arith.addf %24, %22 : vector<16x16xf32>
    %26 = arith.divf %18, %25 : vector<16x16xf32>
    %c0_i32 = arith.constant 0 : i32
    %c3_i32 = arith.constant 3 : i32
    %27 = vector.broadcast %c0_i32 : i32 to vector<16x16xi32>
    %28 = arith.maxsi %27, %3 : vector<16x16xi32>
    %29 = vector.broadcast %c3_i32 : i32 to vector<16x16xi32>
    %30 = arith.minsi %29, %28 : vector<16x16xi32>
    %c1_i32 = arith.constant 1 : i32
    %31 = vector.broadcast %c1_i32 : i32 to vector<16x16xi32>
    %32 = arith.cmpi eq, %30, %31 : vector<16x16xi32>
    %33 = arith.extui %32 : vector<16x16xi1> to vector<16x16xi32>
    %34 = arith.sitofp %33 : vector<16x16xi32> to vector<16x16xf32>
    %c255_i32 = arith.constant 255 : i32
    %35 = vector.broadcast %c255_i32 : i32 to vector<16x16xi32>
    %36 = arith.cmpi ne, %3, %35 : vector<16x16xi32>
    %37 = arith.extui %36 : vector<16x16xi1> to vector<16x16xi32>
    %38 = arith.sitofp %37 : vector<16x16xi32> to vector<16x16xf32>
    %39 = arith.mulf %26, %34 : vector<16x16xf32>
    %40 = arith.mulf %39, %38 : vector<16x16xf32>
    %41 = vector.shape_cast %40 : vector<16x16xf32> to vector<1x16x16xf32>
    %cst = arith.constant dense<0.000000e+00> : vector<1xf32>
    %42 = vector.multi_reduction <add>, %41, %cst [1, 2] : vector<1x16x16xf32> to vector<1xf32>
    %43 = vector.shape_cast %42 : vector<1xf32> to vector<1x1x1xf32>
    %44 = vector.extract %43[0, 0, 0] : f32 from vector<1x1x1xf32>
    %45 = arith.mulf %26, %26 : vector<16x16xf32>
    %46 = arith.addf %45, %34 : vector<16x16xf32>
    %47 = vector.shape_cast %46 : vector<16x16xf32> to vector<1x16x16xf32>
    %cst_6 = arith.constant dense<0.000000e+00> : vector<1xf32>
    %48 = vector.multi_reduction <add>, %47, %cst_6 [1, 2] : vector<1x16x16xf32> to vector<1xf32>
    %49 = vector.shape_cast %48 : vector<1xf32> to vector<1x1x1xf32>
    %50 = vector.extract %49[0, 0, 0] : f32 from vector<1x1x1xf32>
    %cst_7 = arith.constant 1.000000e+00 : f32
    %51 = vector.broadcast %cst_7 : f32 to vector<16x16xf32>
    %52 = arith.subf %51, %34 : vector<16x16xf32>
    %cst_8 = arith.constant 1.000000e+00 : f32
    %53 = vector.broadcast %cst_8 : f32 to vector<16x16xf32>
    %54 = arith.subf %53, %26 : vector<16x16xf32>
    %cst_9 = arith.constant 9.99999997E-7 : f32
    %55 = vector.broadcast %cst_9 : f32 to vector<16x16xf32>
    %56 = arith.addf %54, %55 : vector<16x16xf32>
    %57 = math.log %56 : vector<16x16xf32>
    %58 = arith.mulf %52, %57 : vector<16x16xf32>
    %59 = vector.shape_cast %58 : vector<16x16xf32> to vector<1x16x16xf32>
    %cst_10 = arith.constant dense<0.000000e+00> : vector<1xf32>
    %60 = vector.multi_reduction <add>, %59, %cst_10 [1, 2] : vector<1x16x16xf32> to vector<1xf32>
    %61 = vector.shape_cast %60 : vector<1xf32> to vector<1x1x1xf32>
    %62 = vector.extract %61[0, 0, 0] : f32 from vector<1x1x1xf32>
    %63 = arith.truncf %26 : vector<16x16xf32> to vector<16x16xbf16>
    %64 = arith.truncf %34 : vector<16x16xf32> to vector<16x16xbf16>
    "tpu.trace_start"() <{level = 10 : i32, message = "iw,jw->ij"}> : () -> ()
    %cst_11 = arith.constant dense<0.000000e+00> : vector<16x16xf32>
    %65 = tpu.matmul %63, %64, %cst_11 {dimension_numbers = #tpu.dot_dimension_numbers<[1], [1], [0], [0], [0, 0, 1, 0], [], []>} : vector<16x16xbf16>, vector<16x16xbf16>, vector<16x16xf32> -> vector<16x16xf32>
    "tpu.trace_stop"() : () -> ()
    %66 = arith.extf %63 : vector<16x16xbf16> to vector<16x16xf32>
    %67 = arith.mulf %66, %66 : vector<16x16xf32>
    %cst_12 = arith.constant dense<0.000000e+00> : vector<16xf32>
    %68 = vector.multi_reduction <add>, %67, %cst_12 [1] : vector<16x16xf32> to vector<16xf32>
    %69 = vector.shape_cast %68 : vector<16xf32> to vector<16x1xf32>
    %cst_13 = arith.constant 1.000000e+00 : bf16
    %70 = vector.broadcast %cst_13 : bf16 to vector<1x16xbf16>
    "tpu.trace_start"() <{level = 10 : i32, message = "ow,jw->oj"}> : () -> ()
    %cst_14 = arith.constant dense<0.000000e+00> : vector<1x16xf32>
    %71 = tpu.matmul %70, %64, %cst_14 {dimension_numbers = #tpu.dot_dimension_numbers<[1], [1], [0], [0], [0, 0, 1, 0], [], []>} : vector<1x16xbf16>, vector<16x16xbf16>, vector<1x16xf32> -> vector<1x16xf32>
    "tpu.trace_stop"() : () -> ()
    %72 = vector.broadcast %69 : vector<16x1xf32> to vector<16x16xf32>
    %73 = vector.broadcast %71 : vector<1x16xf32> to vector<16x16xf32>
    %74 = arith.addf %72, %73 : vector<16x16xf32>
    %cst_15 = arith.constant 2.000000e+00 : f32
    %75 = vector.broadcast %cst_15 : f32 to vector<16x16xf32>
    %76 = arith.mulf %75, %65 : vector<16x16xf32>
    %77 = arith.subf %74, %76 : vector<16x16xf32>
    %cst_16 = arith.constant 0.000000e+00 : f32
    %78 = vector.broadcast %cst_16 : f32 to vector<16x16xf32>
    %79 = arith.maximumf %77, %78 : vector<16x16xf32>
    %cst_17 = arith.constant dense<0x7F800000> : vector<16xf32>
    %80 = vector.multi_reduction <minimumf>, %79, %cst_17 [1] : vector<16x16xf32> to vector<16xf32>
    %81 = vector.shape_cast %80 : vector<16xf32> to vector<16x1xf32>
    %82 = vector.shape_cast %81 : vector<16x1xf32> to vector<1x16x1xf32>
    %cst_18 = arith.constant dense<0xFF800000> : vector<1xf32>
    %83 = vector.multi_reduction <maximumf>, %82, %cst_18 [1, 2] : vector<1x16x1xf32> to vector<1xf32>
    %84 = vector.shape_cast %83 : vector<1xf32> to vector<1x1x1xf32>
    %85 = vector.extract %84[0, 0, 0] : f32 from vector<1x1x1xf32>
    %cst_19 = arith.constant dense<0x7F800000> : vector<16xf32>
    %86 = vector.multi_reduction <minimumf>, %79, %cst_19 [0] : vector<16x16xf32> to vector<16xf32>
    %87 = vector.shape_cast %86 : vector<16xf32> to vector<1x16xf32>
    %88 = vector.shape_cast %87 : vector<1x16xf32> to vector<1x1x16xf32>
    %cst_20 = arith.constant dense<0xFF800000> : vector<1xf32>
    %89 = vector.multi_reduction <maximumf>, %88, %cst_20 [1, 2] : vector<1x1x16xf32> to vector<1xf32>
    %90 = vector.shape_cast %89 : vector<1xf32> to vector<1x1x1xf32>
    %91 = vector.extract %90[0, 0, 0] : f32 from vector<1x1x1xf32>
    %92 = arith.maximumf %85, %91 : f32
    %93 = tpu.iota {dimensions = array<i32: 0>} : vector<16x16xi32>
    %94 = tpu.iota {dimensions = array<i32: 1>} : vector<16x16xi32>
    %c1_i32_21 = arith.constant 1 : i32
    %95 = vector.broadcast %c1_i32_21 : i32 to vector<16x16xi32>
    %96 = arith.cmpi slt, %93, %95 : vector<16x16xi32>
    %c15_i32 = arith.constant 15 : i32
    %97 = vector.broadcast %c15_i32 : i32 to vector<16x16xi32>
    %98 = arith.cmpi sge, %93, %97 : vector<16x16xi32>
    %c1_i32_22 = arith.constant 1 : i32
    %99 = vector.broadcast %c1_i32_22 : i32 to vector<16x16xi32>
    %100 = arith.cmpi slt, %94, %99 : vector<16x16xi32>
    %c15_i32_23 = arith.constant 15 : i32
    %101 = vector.broadcast %c15_i32_23 : i32 to vector<16x16xi32>
    %102 = arith.cmpi sge, %94, %101 : vector<16x16xi32>
    %c1_i32_24 = arith.constant 1 : i32
    %103 = tpu.dynamic_rotate %26 by %c1_i32_24 dim 0 : vector<16x16xf32>, i32 -> vector<16x16xf32>
    %cst_25 = arith.constant 0x7F800000 : f32
    %104 = vector.broadcast %cst_25 : f32 to vector<16x16xf32>
    %105 = arith.select %96, %104, %103 : vector<16x16xi1>, vector<16x16xf32>
    %106 = arith.minimumf %105, %26 : vector<16x16xf32>
    %c15_i32_26 = arith.constant 15 : i32
    %107 = tpu.dynamic_rotate %26 by %c15_i32_26 dim 0 : vector<16x16xf32>, i32 -> vector<16x16xf32>
    %cst_27 = arith.constant 0x7F800000 : f32
    %108 = vector.broadcast %cst_27 : f32 to vector<16x16xf32>
    %109 = arith.select %98, %108, %107 : vector<16x16xi1>, vector<16x16xf32>
    %110 = arith.minimumf %106, %109 : vector<16x16xf32>
    %c1_i32_28 = arith.constant 1 : i32
    %111 = tpu.dynamic_rotate %26 by %c1_i32_28 dim 1 : vector<16x16xf32>, i32 -> vector<16x16xf32>
    %cst_29 = arith.constant 0x7F800000 : f32
    %112 = vector.broadcast %cst_29 : f32 to vector<16x16xf32>
    %113 = arith.select %100, %112, %111 : vector<16x16xi1>, vector<16x16xf32>
    %114 = arith.minimumf %113, %26 : vector<16x16xf32>
    %c15_i32_30 = arith.constant 15 : i32
    %115 = tpu.dynamic_rotate %26 by %c15_i32_30 dim 1 : vector<16x16xf32>, i32 -> vector<16x16xf32>
    %cst_31 = arith.constant 0x7F800000 : f32
    %116 = vector.broadcast %cst_31 : f32 to vector<16x16xf32>
    %117 = arith.select %102, %116, %115 : vector<16x16xi1>, vector<16x16xf32>
    %118 = arith.minimumf %114, %117 : vector<16x16xf32>
    %119 = arith.minimumf %110, %118 : vector<16x16xf32>
    %c1_i32_32 = arith.constant 1 : i32
    %120 = tpu.dynamic_rotate %119 by %c1_i32_32 dim 1 : vector<16x16xf32>, i32 -> vector<16x16xf32>
    %cst_33 = arith.constant 0xFF800000 : f32
    %121 = vector.broadcast %cst_33 : f32 to vector<16x16xf32>
    %122 = arith.select %100, %121, %120 : vector<16x16xi1>, vector<16x16xf32>
    %123 = arith.maximumf %122, %119 : vector<16x16xf32>
    %c15_i32_34 = arith.constant 15 : i32
    %124 = tpu.dynamic_rotate %119 by %c15_i32_34 dim 1 : vector<16x16xf32>, i32 -> vector<16x16xf32>
    %cst_35 = arith.constant 0xFF800000 : f32
    %125 = vector.broadcast %cst_35 : f32 to vector<16x16xf32>
    %126 = arith.select %102, %125, %124 : vector<16x16xi1>, vector<16x16xf32>
    %127 = arith.maximumf %123, %126 : vector<16x16xf32>
    %c1_i32_36 = arith.constant 1 : i32
    %128 = tpu.dynamic_rotate %127 by %c1_i32_36 dim 0 : vector<16x16xf32>, i32 -> vector<16x16xf32>
    %cst_37 = arith.constant 0xFF800000 : f32
    %129 = vector.broadcast %cst_37 : f32 to vector<16x16xf32>
    %130 = arith.select %96, %129, %128 : vector<16x16xi1>, vector<16x16xf32>
    %131 = arith.maximumf %130, %127 : vector<16x16xf32>
    %c15_i32_38 = arith.constant 15 : i32
    %132 = tpu.dynamic_rotate %127 by %c15_i32_38 dim 0 : vector<16x16xf32>, i32 -> vector<16x16xf32>
    %cst_39 = arith.constant 0xFF800000 : f32
    %133 = vector.broadcast %cst_39 : f32 to vector<16x16xf32>
    %134 = arith.select %98, %133, %132 : vector<16x16xi1>, vector<16x16xf32>
    %135 = arith.maximumf %131, %134 : vector<16x16xf32>
    %136 = arith.subf %26, %135 : vector<16x16xf32>
    %cst_40 = arith.constant 0.000000e+00 : f32
    %137 = vector.broadcast %cst_40 : f32 to vector<16x16xf32>
    %138 = arith.maximumf %136, %137 : vector<16x16xf32>
    %c1_i32_41 = arith.constant 1 : i32
    %139 = tpu.dynamic_rotate %119 by %c1_i32_41 dim 0 : vector<16x16xf32>, i32 -> vector<16x16xf32>
    %cst_42 = arith.constant 0x7F800000 : f32
    %140 = vector.broadcast %cst_42 : f32 to vector<16x16xf32>
    %141 = arith.select %96, %140, %139 : vector<16x16xi1>, vector<16x16xf32>
    %142 = arith.minimumf %141, %119 : vector<16x16xf32>
    %c15_i32_43 = arith.constant 15 : i32
    %143 = tpu.dynamic_rotate %119 by %c15_i32_43 dim 0 : vector<16x16xf32>, i32 -> vector<16x16xf32>
    %cst_44 = arith.constant 0x7F800000 : f32
    %144 = vector.broadcast %cst_44 : f32 to vector<16x16xf32>
    %145 = arith.select %98, %144, %143 : vector<16x16xi1>, vector<16x16xf32>
    %146 = arith.minimumf %142, %145 : vector<16x16xf32>
    %c1_i32_45 = arith.constant 1 : i32
    %147 = tpu.dynamic_rotate %119 by %c1_i32_45 dim 1 : vector<16x16xf32>, i32 -> vector<16x16xf32>
    %cst_46 = arith.constant 0x7F800000 : f32
    %148 = vector.broadcast %cst_46 : f32 to vector<16x16xf32>
    %149 = arith.select %100, %148, %147 : vector<16x16xi1>, vector<16x16xf32>
    %150 = arith.minimumf %149, %119 : vector<16x16xf32>
    %c15_i32_47 = arith.constant 15 : i32
    %151 = tpu.dynamic_rotate %119 by %c15_i32_47 dim 1 : vector<16x16xf32>, i32 -> vector<16x16xf32>
    %cst_48 = arith.constant 0x7F800000 : f32
    %152 = vector.broadcast %cst_48 : f32 to vector<16x16xf32>
    %153 = arith.select %102, %152, %151 : vector<16x16xi1>, vector<16x16xf32>
    %154 = arith.minimumf %150, %153 : vector<16x16xf32>
    %155 = arith.minimumf %146, %154 : vector<16x16xf32>
    %c1_i32_49 = arith.constant 1 : i32
    %156 = tpu.dynamic_rotate %155 by %c1_i32_49 dim 1 : vector<16x16xf32>, i32 -> vector<16x16xf32>
    %cst_50 = arith.constant 0xFF800000 : f32
    %157 = vector.broadcast %cst_50 : f32 to vector<16x16xf32>
    %158 = arith.select %100, %157, %156 : vector<16x16xi1>, vector<16x16xf32>
    %159 = arith.maximumf %158, %155 : vector<16x16xf32>
    %c15_i32_51 = arith.constant 15 : i32
    %160 = tpu.dynamic_rotate %155 by %c15_i32_51 dim 1 : vector<16x16xf32>, i32 -> vector<16x16xf32>
    %cst_52 = arith.constant 0xFF800000 : f32
    %161 = vector.broadcast %cst_52 : f32 to vector<16x16xf32>
    %162 = arith.select %102, %161, %160 : vector<16x16xi1>, vector<16x16xf32>
    %163 = arith.maximumf %159, %162 : vector<16x16xf32>
    %c1_i32_53 = arith.constant 1 : i32
    %164 = tpu.dynamic_rotate %163 by %c1_i32_53 dim 0 : vector<16x16xf32>, i32 -> vector<16x16xf32>
    %cst_54 = arith.constant 0xFF800000 : f32
    %165 = vector.broadcast %cst_54 : f32 to vector<16x16xf32>
    %166 = arith.select %96, %165, %164 : vector<16x16xi1>, vector<16x16xf32>
    %167 = arith.maximumf %166, %163 : vector<16x16xf32>
    %c15_i32_55 = arith.constant 15 : i32
    %168 = tpu.dynamic_rotate %163 by %c15_i32_55 dim 0 : vector<16x16xf32>, i32 -> vector<16x16xf32>
    %cst_56 = arith.constant 0xFF800000 : f32
    %169 = vector.broadcast %cst_56 : f32 to vector<16x16xf32>
    %170 = arith.select %98, %169, %168 : vector<16x16xi1>, vector<16x16xf32>
    %171 = arith.maximumf %167, %170 : vector<16x16xf32>
    %172 = arith.subf %119, %171 : vector<16x16xf32>
    %cst_57 = arith.constant 0.000000e+00 : f32
    %173 = vector.broadcast %cst_57 : f32 to vector<16x16xf32>
    %174 = arith.maximumf %172, %173 : vector<16x16xf32>
    %175 = arith.mulf %138, %174 : vector<16x16xf32>
    %176 = arith.subf %174, %175 : vector<16x16xf32>
    %cst_58 = arith.constant 0.000000e+00 : f32
    %177 = vector.broadcast %cst_58 : f32 to vector<16x16xf32>
    %178 = arith.maximumf %176, %177 : vector<16x16xf32>
    %179 = arith.addf %138, %178 : vector<16x16xf32>
    %c1_i32_59 = arith.constant 1 : i32
    %180 = tpu.dynamic_rotate %155 by %c1_i32_59 dim 0 : vector<16x16xf32>, i32 -> vector<16x16xf32>
    %cst_60 = arith.constant 0x7F800000 : f32
    %181 = vector.broadcast %cst_60 : f32 to vector<16x16xf32>
    %182 = arith.select %96, %181, %180 : vector<16x16xi1>, vector<16x16xf32>
    %183 = arith.minimumf %182, %155 : vector<16x16xf32>
    %c15_i32_61 = arith.constant 15 : i32
    %184 = tpu.dynamic_rotate %155 by %c15_i32_61 dim 0 : vector<16x16xf32>, i32 -> vector<16x16xf32>
    %cst_62 = arith.constant 0x7F800000 : f32
    %185 = vector.broadcast %cst_62 : f32 to vector<16x16xf32>
    %186 = arith.select %98, %185, %184 : vector<16x16xi1>, vector<16x16xf32>
    %187 = arith.minimumf %183, %186 : vector<16x16xf32>
    %c1_i32_63 = arith.constant 1 : i32
    %188 = tpu.dynamic_rotate %155 by %c1_i32_63 dim 1 : vector<16x16xf32>, i32 -> vector<16x16xf32>
    %cst_64 = arith.constant 0x7F800000 : f32
    %189 = vector.broadcast %cst_64 : f32 to vector<16x16xf32>
    %190 = arith.select %100, %189, %188 : vector<16x16xi1>, vector<16x16xf32>
    %191 = arith.minimumf %190, %155 : vector<16x16xf32>
    %c15_i32_65 = arith.constant 15 : i32
    %192 = tpu.dynamic_rotate %155 by %c15_i32_65 dim 1 : vector<16x16xf32>, i32 -> vector<16x16xf32>
    %cst_66 = arith.constant 0x7F800000 : f32
    %193 = vector.broadcast %cst_66 : f32 to vector<16x16xf32>
    %194 = arith.select %102, %193, %192 : vector<16x16xi1>, vector<16x16xf32>
    %195 = arith.minimumf %191, %194 : vector<16x16xf32>
    %196 = arith.minimumf %187, %195 : vector<16x16xf32>
    %c1_i32_67 = arith.constant 1 : i32
    %197 = tpu.dynamic_rotate %196 by %c1_i32_67 dim 1 : vector<16x16xf32>, i32 -> vector<16x16xf32>
    %cst_68 = arith.constant 0xFF800000 : f32
    %198 = vector.broadcast %cst_68 : f32 to vector<16x16xf32>
    %199 = arith.select %100, %198, %197 : vector<16x16xi1>, vector<16x16xf32>
    %200 = arith.maximumf %199, %196 : vector<16x16xf32>
    %c15_i32_69 = arith.constant 15 : i32
    %201 = tpu.dynamic_rotate %196 by %c15_i32_69 dim 1 : vector<16x16xf32>, i32 -> vector<16x16xf32>
    %cst_70 = arith.constant 0xFF800000 : f32
    %202 = vector.broadcast %cst_70 : f32 to vector<16x16xf32>
    %203 = arith.select %102, %202, %201 : vector<16x16xi1>, vector<16x16xf32>
    %204 = arith.maximumf %200, %203 : vector<16x16xf32>
    %c1_i32_71 = arith.constant 1 : i32
    %205 = tpu.dynamic_rotate %204 by %c1_i32_71 dim 0 : vector<16x16xf32>, i32 -> vector<16x16xf32>
    %cst_72 = arith.constant 0xFF800000 : f32
    %206 = vector.broadcast %cst_72 : f32 to vector<16x16xf32>
    %207 = arith.select %96, %206, %205 : vector<16x16xi1>, vector<16x16xf32>
    %208 = arith.maximumf %207, %204 : vector<16x16xf32>
    %c15_i32_73 = arith.constant 15 : i32
    %209 = tpu.dynamic_rotate %204 by %c15_i32_73 dim 0 : vector<16x16xf32>, i32 -> vector<16x16xf32>
    %cst_74 = arith.constant 0xFF800000 : f32
    %210 = vector.broadcast %cst_74 : f32 to vector<16x16xf32>
    %211 = arith.select %98, %210, %209 : vector<16x16xi1>, vector<16x16xf32>
    %212 = arith.maximumf %208, %211 : vector<16x16xf32>
    %213 = arith.subf %155, %212 : vector<16x16xf32>
    %cst_75 = arith.constant 0.000000e+00 : f32
    %214 = vector.broadcast %cst_75 : f32 to vector<16x16xf32>
    %215 = arith.maximumf %213, %214 : vector<16x16xf32>
    %216 = arith.mulf %179, %215 : vector<16x16xf32>
    %217 = arith.subf %215, %216 : vector<16x16xf32>
    %cst_76 = arith.constant 0.000000e+00 : f32
    %218 = vector.broadcast %cst_76 : f32 to vector<16x16xf32>
    %219 = arith.maximumf %217, %218 : vector<16x16xf32>
    %220 = arith.addf %179, %219 : vector<16x16xf32>
    %c1_i32_77 = arith.constant 1 : i32
    %221 = tpu.dynamic_rotate %196 by %c1_i32_77 dim 0 : vector<16x16xf32>, i32 -> vector<16x16xf32>
    %cst_78 = arith.constant 0x7F800000 : f32
    %222 = vector.broadcast %cst_78 : f32 to vector<16x16xf32>
    %223 = arith.select %96, %222, %221 : vector<16x16xi1>, vector<16x16xf32>
    %224 = arith.minimumf %223, %196 : vector<16x16xf32>
    %c15_i32_79 = arith.constant 15 : i32
    %225 = tpu.dynamic_rotate %196 by %c15_i32_79 dim 0 : vector<16x16xf32>, i32 -> vector<16x16xf32>
    %cst_80 = arith.constant 0x7F800000 : f32
    %226 = vector.broadcast %cst_80 : f32 to vector<16x16xf32>
    %227 = arith.select %98, %226, %225 : vector<16x16xi1>, vector<16x16xf32>
    %228 = arith.minimumf %224, %227 : vector<16x16xf32>
    %c1_i32_81 = arith.constant 1 : i32
    %229 = tpu.dynamic_rotate %196 by %c1_i32_81 dim 1 : vector<16x16xf32>, i32 -> vector<16x16xf32>
    %cst_82 = arith.constant 0x7F800000 : f32
    %230 = vector.broadcast %cst_82 : f32 to vector<16x16xf32>
    %231 = arith.select %100, %230, %229 : vector<16x16xi1>, vector<16x16xf32>
    %232 = arith.minimumf %231, %196 : vector<16x16xf32>
    %c15_i32_83 = arith.constant 15 : i32
    %233 = tpu.dynamic_rotate %196 by %c15_i32_83 dim 1 : vector<16x16xf32>, i32 -> vector<16x16xf32>
    %cst_84 = arith.constant 0x7F800000 : f32
    %234 = vector.broadcast %cst_84 : f32 to vector<16x16xf32>
    %235 = arith.select %102, %234, %233 : vector<16x16xi1>, vector<16x16xf32>
    %236 = arith.minimumf %232, %235 : vector<16x16xf32>
    %237 = arith.minimumf %228, %236 : vector<16x16xf32>
    %c1_i32_85 = arith.constant 1 : i32
    %238 = tpu.dynamic_rotate %237 by %c1_i32_85 dim 1 : vector<16x16xf32>, i32 -> vector<16x16xf32>
    %cst_86 = arith.constant 0xFF800000 : f32
    %239 = vector.broadcast %cst_86 : f32 to vector<16x16xf32>
    %240 = arith.select %100, %239, %238 : vector<16x16xi1>, vector<16x16xf32>
    %241 = arith.maximumf %240, %237 : vector<16x16xf32>
    %c15_i32_87 = arith.constant 15 : i32
    %242 = tpu.dynamic_rotate %237 by %c15_i32_87 dim 1 : vector<16x16xf32>, i32 -> vector<16x16xf32>
    %cst_88 = arith.constant 0xFF800000 : f32
    %243 = vector.broadcast %cst_88 : f32 to vector<16x16xf32>
    %244 = arith.select %102, %243, %242 : vector<16x16xi1>, vector<16x16xf32>
    %245 = arith.maximumf %241, %244 : vector<16x16xf32>
    %c1_i32_89 = arith.constant 1 : i32
    %246 = tpu.dynamic_rotate %245 by %c1_i32_89 dim 0 : vector<16x16xf32>, i32 -> vector<16x16xf32>
    %cst_90 = arith.constant 0xFF800000 : f32
    %247 = vector.broadcast %cst_90 : f32 to vector<16x16xf32>
    %248 = arith.select %96, %247, %246 : vector<16x16xi1>, vector<16x16xf32>
    %249 = arith.maximumf %248, %245 : vector<16x16xf32>
    %c15_i32_91 = arith.constant 15 : i32
    %250 = tpu.dynamic_rotate %245 by %c15_i32_91 dim 0 : vector<16x16xf32>, i32 -> vector<16x16xf32>
    %cst_92 = arith.constant 0xFF800000 : f32
    %251 = vector.broadcast %cst_92 : f32 to vector<16x16xf32>
    %252 = arith.select %98, %251, %250 : vector<16x16xi1>, vector<16x16xf32>
    %253 = arith.maximumf %249, %252 : vector<16x16xf32>
    %254 = arith.subf %196, %253 : vector<16x16xf32>
    %cst_93 = arith.constant 0.000000e+00 : f32
    %255 = vector.broadcast %cst_93 : f32 to vector<16x16xf32>
    %256 = arith.maximumf %254, %255 : vector<16x16xf32>
    %257 = arith.mulf %220, %256 : vector<16x16xf32>
    %258 = arith.subf %256, %257 : vector<16x16xf32>
    %cst_94 = arith.constant 0.000000e+00 : f32
    %259 = vector.broadcast %cst_94 : f32 to vector<16x16xf32>
    %260 = arith.maximumf %258, %259 : vector<16x16xf32>
    %261 = arith.addf %220, %260 : vector<16x16xf32>
    %c1_i32_95 = arith.constant 1 : i32
    %262 = tpu.dynamic_rotate %34 by %c1_i32_95 dim 0 : vector<16x16xf32>, i32 -> vector<16x16xf32>
    %cst_96 = arith.constant 0x7F800000 : f32
    %263 = vector.broadcast %cst_96 : f32 to vector<16x16xf32>
    %264 = arith.select %96, %263, %262 : vector<16x16xi1>, vector<16x16xf32>
    %265 = arith.minimumf %264, %34 : vector<16x16xf32>
    %c15_i32_97 = arith.constant 15 : i32
    %266 = tpu.dynamic_rotate %34 by %c15_i32_97 dim 0 : vector<16x16xf32>, i32 -> vector<16x16xf32>
    %cst_98 = arith.constant 0x7F800000 : f32
    %267 = vector.broadcast %cst_98 : f32 to vector<16x16xf32>
    %268 = arith.select %98, %267, %266 : vector<16x16xi1>, vector<16x16xf32>
    %269 = arith.minimumf %265, %268 : vector<16x16xf32>
    %c1_i32_99 = arith.constant 1 : i32
    %270 = tpu.dynamic_rotate %34 by %c1_i32_99 dim 1 : vector<16x16xf32>, i32 -> vector<16x16xf32>
    %cst_100 = arith.constant 0x7F800000 : f32
    %271 = vector.broadcast %cst_100 : f32 to vector<16x16xf32>
    %272 = arith.select %100, %271, %270 : vector<16x16xi1>, vector<16x16xf32>
    %273 = arith.minimumf %272, %34 : vector<16x16xf32>
    %c15_i32_101 = arith.constant 15 : i32
    %274 = tpu.dynamic_rotate %34 by %c15_i32_101 dim 1 : vector<16x16xf32>, i32 -> vector<16x16xf32>
    %cst_102 = arith.constant 0x7F800000 : f32
    %275 = vector.broadcast %cst_102 : f32 to vector<16x16xf32>
    %276 = arith.select %102, %275, %274 : vector<16x16xi1>, vector<16x16xf32>
    %277 = arith.minimumf %273, %276 : vector<16x16xf32>
    %278 = arith.minimumf %269, %277 : vector<16x16xf32>
    %c1_i32_103 = arith.constant 1 : i32
    %279 = tpu.dynamic_rotate %278 by %c1_i32_103 dim 1 : vector<16x16xf32>, i32 -> vector<16x16xf32>
    %cst_104 = arith.constant 0xFF800000 : f32
    %280 = vector.broadcast %cst_104 : f32 to vector<16x16xf32>
    %281 = arith.select %100, %280, %279 : vector<16x16xi1>, vector<16x16xf32>
    %282 = arith.maximumf %281, %278 : vector<16x16xf32>
    %c15_i32_105 = arith.constant 15 : i32
    %283 = tpu.dynamic_rotate %278 by %c15_i32_105 dim 1 : vector<16x16xf32>, i32 -> vector<16x16xf32>
    %cst_106 = arith.constant 0xFF800000 : f32
    %284 = vector.broadcast %cst_106 : f32 to vector<16x16xf32>
    %285 = arith.select %102, %284, %283 : vector<16x16xi1>, vector<16x16xf32>
    %286 = arith.maximumf %282, %285 : vector<16x16xf32>
    %c1_i32_107 = arith.constant 1 : i32
    %287 = tpu.dynamic_rotate %286 by %c1_i32_107 dim 0 : vector<16x16xf32>, i32 -> vector<16x16xf32>
    %cst_108 = arith.constant 0xFF800000 : f32
    %288 = vector.broadcast %cst_108 : f32 to vector<16x16xf32>
    %289 = arith.select %96, %288, %287 : vector<16x16xi1>, vector<16x16xf32>
    %290 = arith.maximumf %289, %286 : vector<16x16xf32>
    %c15_i32_109 = arith.constant 15 : i32
    %291 = tpu.dynamic_rotate %286 by %c15_i32_109 dim 0 : vector<16x16xf32>, i32 -> vector<16x16xf32>
    %cst_110 = arith.constant 0xFF800000 : f32
    %292 = vector.broadcast %cst_110 : f32 to vector<16x16xf32>
    %293 = arith.select %98, %292, %291 : vector<16x16xi1>, vector<16x16xf32>
    %294 = arith.maximumf %290, %293 : vector<16x16xf32>
    %295 = arith.subf %34, %294 : vector<16x16xf32>
    %cst_111 = arith.constant 0.000000e+00 : f32
    %296 = vector.broadcast %cst_111 : f32 to vector<16x16xf32>
    %297 = arith.maximumf %295, %296 : vector<16x16xf32>
    %c1_i32_112 = arith.constant 1 : i32
    %298 = tpu.dynamic_rotate %278 by %c1_i32_112 dim 0 : vector<16x16xf32>, i32 -> vector<16x16xf32>
    %cst_113 = arith.constant 0x7F800000 : f32
    %299 = vector.broadcast %cst_113 : f32 to vector<16x16xf32>
    %300 = arith.select %96, %299, %298 : vector<16x16xi1>, vector<16x16xf32>
    %301 = arith.minimumf %300, %278 : vector<16x16xf32>
    %c15_i32_114 = arith.constant 15 : i32
    %302 = tpu.dynamic_rotate %278 by %c15_i32_114 dim 0 : vector<16x16xf32>, i32 -> vector<16x16xf32>
    %cst_115 = arith.constant 0x7F800000 : f32
    %303 = vector.broadcast %cst_115 : f32 to vector<16x16xf32>
    %304 = arith.select %98, %303, %302 : vector<16x16xi1>, vector<16x16xf32>
    %305 = arith.minimumf %301, %304 : vector<16x16xf32>
    %c1_i32_116 = arith.constant 1 : i32
    %306 = tpu.dynamic_rotate %278 by %c1_i32_116 dim 1 : vector<16x16xf32>, i32 -> vector<16x16xf32>
    %cst_117 = arith.constant 0x7F800000 : f32
    %307 = vector.broadcast %cst_117 : f32 to vector<16x16xf32>
    %308 = arith.select %100, %307, %306 : vector<16x16xi1>, vector<16x16xf32>
    %309 = arith.minimumf %308, %278 : vector<16x16xf32>
    %c15_i32_118 = arith.constant 15 : i32
    %310 = tpu.dynamic_rotate %278 by %c15_i32_118 dim 1 : vector<16x16xf32>, i32 -> vector<16x16xf32>
    %cst_119 = arith.constant 0x7F800000 : f32
    %311 = vector.broadcast %cst_119 : f32 to vector<16x16xf32>
    %312 = arith.select %102, %311, %310 : vector<16x16xi1>, vector<16x16xf32>
    %313 = arith.minimumf %309, %312 : vector<16x16xf32>
    %314 = arith.minimumf %305, %313 : vector<16x16xf32>
    %c1_i32_120 = arith.constant 1 : i32
    %315 = tpu.dynamic_rotate %314 by %c1_i32_120 dim 1 : vector<16x16xf32>, i32 -> vector<16x16xf32>
    %cst_121 = arith.constant 0xFF800000 : f32
    %316 = vector.broadcast %cst_121 : f32 to vector<16x16xf32>
    %317 = arith.select %100, %316, %315 : vector<16x16xi1>, vector<16x16xf32>
    %318 = arith.maximumf %317, %314 : vector<16x16xf32>
    %c15_i32_122 = arith.constant 15 : i32
    %319 = tpu.dynamic_rotate %314 by %c15_i32_122 dim 1 : vector<16x16xf32>, i32 -> vector<16x16xf32>
    %cst_123 = arith.constant 0xFF800000 : f32
    %320 = vector.broadcast %cst_123 : f32 to vector<16x16xf32>
    %321 = arith.select %102, %320, %319 : vector<16x16xi1>, vector<16x16xf32>
    %322 = arith.maximumf %318, %321 : vector<16x16xf32>
    %c1_i32_124 = arith.constant 1 : i32
    %323 = tpu.dynamic_rotate %322 by %c1_i32_124 dim 0 : vector<16x16xf32>, i32 -> vector<16x16xf32>
    %cst_125 = arith.constant 0xFF800000 : f32
    %324 = vector.broadcast %cst_125 : f32 to vector<16x16xf32>
    %325 = arith.select %96, %324, %323 : vector<16x16xi1>, vector<16x16xf32>
    %326 = arith.maximumf %325, %322 : vector<16x16xf32>
    %c15_i32_126 = arith.constant 15 : i32
    %327 = tpu.dynamic_rotate %322 by %c15_i32_126 dim 0 : vector<16x16xf32>, i32 -> vector<16x16xf32>
    %cst_127 = arith.constant 0xFF800000 : f32
    %328 = vector.broadcast %cst_127 : f32 to vector<16x16xf32>
    %329 = arith.select %98, %328, %327 : vector<16x16xi1>, vector<16x16xf32>
    %330 = arith.maximumf %326, %329 : vector<16x16xf32>
    %331 = arith.subf %278, %330 : vector<16x16xf32>
    %cst_128 = arith.constant 0.000000e+00 : f32
    %332 = vector.broadcast %cst_128 : f32 to vector<16x16xf32>
    %333 = arith.maximumf %331, %332 : vector<16x16xf32>
    %334 = arith.mulf %297, %333 : vector<16x16xf32>
    %335 = arith.subf %333, %334 : vector<16x16xf32>
    %cst_129 = arith.constant 0.000000e+00 : f32
    %336 = vector.broadcast %cst_129 : f32 to vector<16x16xf32>
    %337 = arith.maximumf %335, %336 : vector<16x16xf32>
    %338 = arith.addf %297, %337 : vector<16x16xf32>
    %c1_i32_130 = arith.constant 1 : i32
    %339 = tpu.dynamic_rotate %314 by %c1_i32_130 dim 0 : vector<16x16xf32>, i32 -> vector<16x16xf32>
    %cst_131 = arith.constant 0x7F800000 : f32
    %340 = vector.broadcast %cst_131 : f32 to vector<16x16xf32>
    %341 = arith.select %96, %340, %339 : vector<16x16xi1>, vector<16x16xf32>
    %342 = arith.minimumf %341, %314 : vector<16x16xf32>
    %c15_i32_132 = arith.constant 15 : i32
    %343 = tpu.dynamic_rotate %314 by %c15_i32_132 dim 0 : vector<16x16xf32>, i32 -> vector<16x16xf32>
    %cst_133 = arith.constant 0x7F800000 : f32
    %344 = vector.broadcast %cst_133 : f32 to vector<16x16xf32>
    %345 = arith.select %98, %344, %343 : vector<16x16xi1>, vector<16x16xf32>
    %346 = arith.minimumf %342, %345 : vector<16x16xf32>
    %c1_i32_134 = arith.constant 1 : i32
    %347 = tpu.dynamic_rotate %314 by %c1_i32_134 dim 1 : vector<16x16xf32>, i32 -> vector<16x16xf32>
    %cst_135 = arith.constant 0x7F800000 : f32
    %348 = vector.broadcast %cst_135 : f32 to vector<16x16xf32>
    %349 = arith.select %100, %348, %347 : vector<16x16xi1>, vector<16x16xf32>
    %350 = arith.minimumf %349, %314 : vector<16x16xf32>
    %c15_i32_136 = arith.constant 15 : i32
    %351 = tpu.dynamic_rotate %314 by %c15_i32_136 dim 1 : vector<16x16xf32>, i32 -> vector<16x16xf32>
    %cst_137 = arith.constant 0x7F800000 : f32
    %352 = vector.broadcast %cst_137 : f32 to vector<16x16xf32>
    %353 = arith.select %102, %352, %351 : vector<16x16xi1>, vector<16x16xf32>
    %354 = arith.minimumf %350, %353 : vector<16x16xf32>
    %355 = arith.minimumf %346, %354 : vector<16x16xf32>
    %c1_i32_138 = arith.constant 1 : i32
    %356 = tpu.dynamic_rotate %355 by %c1_i32_138 dim 1 : vector<16x16xf32>, i32 -> vector<16x16xf32>
    %cst_139 = arith.constant 0xFF800000 : f32
    %357 = vector.broadcast %cst_139 : f32 to vector<16x16xf32>
    %358 = arith.select %100, %357, %356 : vector<16x16xi1>, vector<16x16xf32>
    %359 = arith.maximumf %358, %355 : vector<16x16xf32>
    %c15_i32_140 = arith.constant 15 : i32
    %360 = tpu.dynamic_rotate %355 by %c15_i32_140 dim 1 : vector<16x16xf32>, i32 -> vector<16x16xf32>
    %cst_141 = arith.constant 0xFF800000 : f32
    %361 = vector.broadcast %cst_141 : f32 to vector<16x16xf32>
    %362 = arith.select %102, %361, %360 : vector<16x16xi1>, vector<16x16xf32>
    %363 = arith.maximumf %359, %362 : vector<16x16xf32>
    %c1_i32_142 = arith.constant 1 : i32
    %364 = tpu.dynamic_rotate %363 by %c1_i32_142 dim 0 : vector<16x16xf32>, i32 -> vector<16x16xf32>
    %cst_143 = arith.constant 0xFF800000 : f32
    %365 = vector.broadcast %cst_143 : f32 to vector<16x16xf32>
    %366 = arith.select %96, %365, %364 : vector<16x16xi1>, vector<16x16xf32>
    %367 = arith.maximumf %366, %363 : vector<16x16xf32>
    %c15_i32_144 = arith.constant 15 : i32
    %368 = tpu.dynamic_rotate %363 by %c15_i32_144 dim 0 : vector<16x16xf32>, i32 -> vector<16x16xf32>
    %cst_145 = arith.constant 0xFF800000 : f32
    %369 = vector.broadcast %cst_145 : f32 to vector<16x16xf32>
    %370 = arith.select %98, %369, %368 : vector<16x16xi1>, vector<16x16xf32>
    %371 = arith.maximumf %367, %370 : vector<16x16xf32>
    %372 = arith.subf %314, %371 : vector<16x16xf32>
    %cst_146 = arith.constant 0.000000e+00 : f32
    %373 = vector.broadcast %cst_146 : f32 to vector<16x16xf32>
    %374 = arith.maximumf %372, %373 : vector<16x16xf32>
    %375 = arith.mulf %338, %374 : vector<16x16xf32>
    %376 = arith.subf %374, %375 : vector<16x16xf32>
    %cst_147 = arith.constant 0.000000e+00 : f32
    %377 = vector.broadcast %cst_147 : f32 to vector<16x16xf32>
    %378 = arith.maximumf %376, %377 : vector<16x16xf32>
    %379 = arith.addf %338, %378 : vector<16x16xf32>
    %c1_i32_148 = arith.constant 1 : i32
    %380 = tpu.dynamic_rotate %355 by %c1_i32_148 dim 0 : vector<16x16xf32>, i32 -> vector<16x16xf32>
    %cst_149 = arith.constant 0x7F800000 : f32
    %381 = vector.broadcast %cst_149 : f32 to vector<16x16xf32>
    %382 = arith.select %96, %381, %380 : vector<16x16xi1>, vector<16x16xf32>
    %383 = arith.minimumf %382, %355 : vector<16x16xf32>
    %c15_i32_150 = arith.constant 15 : i32
    %384 = tpu.dynamic_rotate %355 by %c15_i32_150 dim 0 : vector<16x16xf32>, i32 -> vector<16x16xf32>
    %cst_151 = arith.constant 0x7F800000 : f32
    %385 = vector.broadcast %cst_151 : f32 to vector<16x16xf32>
    %386 = arith.select %98, %385, %384 : vector<16x16xi1>, vector<16x16xf32>
    %387 = arith.minimumf %383, %386 : vector<16x16xf32>
    %c1_i32_152 = arith.constant 1 : i32
    %388 = tpu.dynamic_rotate %355 by %c1_i32_152 dim 1 : vector<16x16xf32>, i32 -> vector<16x16xf32>
    %cst_153 = arith.constant 0x7F800000 : f32
    %389 = vector.broadcast %cst_153 : f32 to vector<16x16xf32>
    %390 = arith.select %100, %389, %388 : vector<16x16xi1>, vector<16x16xf32>
    %391 = arith.minimumf %390, %355 : vector<16x16xf32>
    %c15_i32_154 = arith.constant 15 : i32
    %392 = tpu.dynamic_rotate %355 by %c15_i32_154 dim 1 : vector<16x16xf32>, i32 -> vector<16x16xf32>
    %cst_155 = arith.constant 0x7F800000 : f32
    %393 = vector.broadcast %cst_155 : f32 to vector<16x16xf32>
    %394 = arith.select %102, %393, %392 : vector<16x16xi1>, vector<16x16xf32>
    %395 = arith.minimumf %391, %394 : vector<16x16xf32>
    %396 = arith.minimumf %387, %395 : vector<16x16xf32>
    %c1_i32_156 = arith.constant 1 : i32
    %397 = tpu.dynamic_rotate %396 by %c1_i32_156 dim 1 : vector<16x16xf32>, i32 -> vector<16x16xf32>
    %cst_157 = arith.constant 0xFF800000 : f32
    %398 = vector.broadcast %cst_157 : f32 to vector<16x16xf32>
    %399 = arith.select %100, %398, %397 : vector<16x16xi1>, vector<16x16xf32>
    %400 = arith.maximumf %399, %396 : vector<16x16xf32>
    %c15_i32_158 = arith.constant 15 : i32
    %401 = tpu.dynamic_rotate %396 by %c15_i32_158 dim 1 : vector<16x16xf32>, i32 -> vector<16x16xf32>
    %cst_159 = arith.constant 0xFF800000 : f32
    %402 = vector.broadcast %cst_159 : f32 to vector<16x16xf32>
    %403 = arith.select %102, %402, %401 : vector<16x16xi1>, vector<16x16xf32>
    %404 = arith.maximumf %400, %403 : vector<16x16xf32>
    %c1_i32_160 = arith.constant 1 : i32
    %405 = tpu.dynamic_rotate %404 by %c1_i32_160 dim 0 : vector<16x16xf32>, i32 -> vector<16x16xf32>
    %cst_161 = arith.constant 0xFF800000 : f32
    %406 = vector.broadcast %cst_161 : f32 to vector<16x16xf32>
    %407 = arith.select %96, %406, %405 : vector<16x16xi1>, vector<16x16xf32>
    %408 = arith.maximumf %407, %404 : vector<16x16xf32>
    %c15_i32_162 = arith.constant 15 : i32
    %409 = tpu.dynamic_rotate %404 by %c15_i32_162 dim 0 : vector<16x16xf32>, i32 -> vector<16x16xf32>
    %cst_163 = arith.constant 0xFF800000 : f32
    %410 = vector.broadcast %cst_163 : f32 to vector<16x16xf32>
    %411 = arith.select %98, %410, %409 : vector<16x16xi1>, vector<16x16xf32>
    %412 = arith.maximumf %408, %411 : vector<16x16xf32>
    %413 = arith.subf %355, %412 : vector<16x16xf32>
    %cst_164 = arith.constant 0.000000e+00 : f32
    %414 = vector.broadcast %cst_164 : f32 to vector<16x16xf32>
    %415 = arith.maximumf %413, %414 : vector<16x16xf32>
    %416 = arith.mulf %379, %415 : vector<16x16xf32>
    %417 = arith.subf %415, %416 : vector<16x16xf32>
    %cst_165 = arith.constant 0.000000e+00 : f32
    %418 = vector.broadcast %cst_165 : f32 to vector<16x16xf32>
    %419 = arith.maximumf %417, %418 : vector<16x16xf32>
    %420 = arith.addf %379, %419 : vector<16x16xf32>
    %421 = arith.mulf %261, %34 : vector<16x16xf32>
    %422 = vector.shape_cast %421 : vector<16x16xf32> to vector<1x16x16xf32>
    %cst_166 = arith.constant dense<0.000000e+00> : vector<1xf32>
    %423 = vector.multi_reduction <add>, %422, %cst_166 [1, 2] : vector<1x16x16xf32> to vector<1xf32>
    %424 = vector.shape_cast %423 : vector<1xf32> to vector<1x1x1xf32>
    %425 = vector.extract %424[0, 0, 0] : f32 from vector<1x1x1xf32>
    %426 = vector.shape_cast %261 : vector<16x16xf32> to vector<1x16x16xf32>
    %cst_167 = arith.constant dense<0.000000e+00> : vector<1xf32>
    %427 = vector.multi_reduction <add>, %426, %cst_167 [1, 2] : vector<1x16x16xf32> to vector<1xf32>
    %428 = vector.shape_cast %427 : vector<1xf32> to vector<1x1x1xf32>
    %429 = vector.extract %428[0, 0, 0] : f32 from vector<1x1x1xf32>
    %430 = arith.mulf %420, %26 : vector<16x16xf32>
    %431 = vector.shape_cast %430 : vector<16x16xf32> to vector<1x16x16xf32>
    %cst_168 = arith.constant dense<0.000000e+00> : vector<1xf32>
    %432 = vector.multi_reduction <add>, %431, %cst_168 [1, 2] : vector<1x16x16xf32> to vector<1xf32>
    %433 = vector.shape_cast %432 : vector<1xf32> to vector<1x1x1xf32>
    %434 = vector.extract %433[0, 0, 0] : f32 from vector<1x1x1xf32>
    %435 = vector.shape_cast %420 : vector<16x16xf32> to vector<1x16x16xf32>
    %cst_169 = arith.constant dense<0.000000e+00> : vector<1xf32>
    %436 = vector.multi_reduction <add>, %435, %cst_169 [1, 2] : vector<1x16x16xf32> to vector<1xf32>
    %437 = vector.shape_cast %436 : vector<1xf32> to vector<1x1x1xf32>
    %438 = vector.extract %437[0, 0, 0] : f32 from vector<1x1x1xf32>
    %439 = tpu.iota {dimensions = array<i32: 0>} : vector<8x128xi32>
    %cst_170 = arith.constant 0.000000e+00 : f32
    %440 = vector.broadcast %cst_170 : f32 to vector<8x128xf32>
    %c0_i32_171 = arith.constant 0 : i32
    %441 = vector.broadcast %c0_i32_171 : i32 to vector<8x128xi32>
    %442 = arith.cmpi eq, %439, %441 : vector<8x128xi32>
    %443 = vector.broadcast %44 : f32 to vector<8x128xf32>
    %444 = arith.select %442, %443, %440 : vector<8x128xi1>, vector<8x128xf32>
    %c1_i32_172 = arith.constant 1 : i32
    %445 = vector.broadcast %c1_i32_172 : i32 to vector<8x128xi32>
    %446 = arith.cmpi eq, %439, %445 : vector<8x128xi32>
    %447 = vector.broadcast %50 : f32 to vector<8x128xf32>
    %448 = arith.select %446, %447, %444 : vector<8x128xi1>, vector<8x128xf32>
    %c2_i32 = arith.constant 2 : i32
    %449 = vector.broadcast %c2_i32 : i32 to vector<8x128xi32>
    %450 = arith.cmpi eq, %439, %449 : vector<8x128xi32>
    %451 = vector.broadcast %62 : f32 to vector<8x128xf32>
    %452 = arith.select %450, %451, %448 : vector<8x128xi1>, vector<8x128xf32>
    %c3_i32_173 = arith.constant 3 : i32
    %453 = vector.broadcast %c3_i32_173 : i32 to vector<8x128xi32>
    %454 = arith.cmpi eq, %439, %453 : vector<8x128xi32>
    %455 = vector.broadcast %92 : f32 to vector<8x128xf32>
    %456 = arith.select %454, %455, %452 : vector<8x128xi1>, vector<8x128xf32>
    %c4_i32 = arith.constant 4 : i32
    %457 = vector.broadcast %c4_i32 : i32 to vector<8x128xi32>
    %458 = arith.cmpi eq, %439, %457 : vector<8x128xi32>
    %459 = vector.broadcast %425 : f32 to vector<8x128xf32>
    %460 = arith.select %458, %459, %456 : vector<8x128xi1>, vector<8x128xf32>
    %c5_i32 = arith.constant 5 : i32
    %461 = vector.broadcast %c5_i32 : i32 to vector<8x128xi32>
    %462 = arith.cmpi eq, %439, %461 : vector<8x128xi32>
    %463 = vector.broadcast %429 : f32 to vector<8x128xf32>
    %464 = arith.select %462, %463, %460 : vector<8x128xi1>, vector<8x128xf32>
    %c6_i32 = arith.constant 6 : i32
    %465 = vector.broadcast %c6_i32 : i32 to vector<8x128xi32>
    %466 = arith.cmpi eq, %439, %465 : vector<8x128xi32>
    %467 = vector.broadcast %434 : f32 to vector<8x128xf32>
    %468 = arith.select %466, %467, %464 : vector<8x128xi1>, vector<8x128xf32>
    %c7_i32 = arith.constant 7 : i32
    %469 = vector.broadcast %c7_i32 : i32 to vector<8x128xi32>
    %470 = arith.cmpi eq, %439, %469 : vector<8x128xi32>
    %471 = vector.broadcast %438 : f32 to vector<8x128xf32>
    %472 = arith.select %470, %471, %468 : vector<8x128xi1>, vector<8x128xf32>
    %c0_174 = arith.constant 0 : index
    %c0_175 = arith.constant 0 : index
    %c0_176 = arith.constant 0 : index
    %473 = vector.load %arg3[%c0_174, %c0_175, %c0_176] : memref<1x8x128xf32, #tpu.memory_space<vmem>>, vector<1x8x128xf32>
    %474 = vector.shape_cast %473 : vector<1x8x128xf32> to vector<8x128xf32>
    %475 = vector.shape_cast %472 : vector<8x128xf32> to vector<1x8x128xf32>
    tpu.vector_store %arg3[%c0_174, %c0_175, %c0_176], %475 {strides = array<i32>} : memref<1x8x128xf32, #tpu.memory_space<vmem>>, vector<1x8x128xf32>,
    return
  }
  func.func @transform_0(%arg0: i32) -> (i32, i32, i32, i32) {
    %c0_i32 = arith.constant 0 : i32
    %c0_i32_0 = arith.constant 0 : i32
    %c0_i32_1 = arith.constant 0 : i32
    %c0_i32_2 = arith.constant 0 : i32
    return %arg0, %c0_i32, %c0_i32_0, %c0_i32_1 : i32, i32, i32, i32
  }
  func.func @transform_1(%arg0: i32) -> (i32, i32, i32) {
    %c0_i32 = arith.constant 0 : i32
    %c0_i32_0 = arith.constant 0 : i32
    %c0_i32_1 = arith.constant 0 : i32
    return %arg0, %c0_i32, %c0_i32_0 : i32, i32, i32
  }
  func.func @transform_2(%arg0: i32) -> (i32, i32, i32) {
    %c0_i32 = arith.constant 0 : i32
    %c0_i32_0 = arith.constant 0 : i32
    %c0_i32_1 = arith.constant 0 : i32
    return %arg0, %c0_i32, %c0_i32_0 : i32, i32, i32
  }
}

</mosaic_0001>

<bundles_post_ra>
// kernel: cp_cldice_loss.1
= control target key start
LH: loop header
LB: loop body
LE: loop exit
PB: predicated region body
PF: predicated region fallthrough
CT: control target
= control target key end

     0   :  { %7 = vsyncpa [#allocation3], 0  ;;  %s2585_s0 = inlined_call_operand.hbm [shape: f32[2,4,16,16], index: 0, kind: input, shape index: {}]   ;;  %s2586_s1 = inlined_call_operand.hbm [shape: s32[2,16,16], index: 1, kind: input, shape index: {}]   ;;  %s2587_s2 = inlined_call_operand.vmem [shape: f32[2,8,128], index: 2, kind: output, shape index: {}]  }
   0x1   :  { %9 = vsyncpa [#allocation3 + $0x1], 0 }
   0x2   :  { %10 = vsyncpa [#allocation5], 0 }
   0x3   :  { %12 = vsyncpa [#allocation5 + $0x1], 0  ;;  %s1708_s9 = smov 0   ;;  %s1710_s10 = smov 0  }
   0x4   :  { %s1712_s11 = smov 0   ;;  %s1714_s12 = smov 0  }
   0x5 LB: > { %s1727_s13 = sadd.s32 4294967295, %s1684_s12   ;;  %s1730_s14 = sadd.s32 1, %s1684_s12   ;;  %s1684_s12 = sphi %s1714_s12, %s2595_s12   ;;  %s1680_s11 = sphi %s1712_s11, %s2594_s11   ;;  %s1676_s10 = sphi %s1710_s10, %s2593_s10   ;;  %s1672_s9 = sphi %s1708_s9, %s2592_s9  }
   0x6   : > { %s22_s15 = ssub.s32 %s1684_s12, %s1730_s14  ;;  %s25_s16 = sadd.s32 1, %s1680_s11 }
   0x7   : > { %p23_p0 = scmp.eq.s32.totalorder %s22_s15, 0  ;;  %p32_p1 = scmp.ne.s32.totalorder %s1680_s11, %s1676_s10 }
   0x8   : > { %p33_p2 = scmp.eq.s32.totalorder %s1684_s12, 0  ;;  %p38_p3 = scmp.ne.s32.totalorder %s1676_s10, %s1672_s9 }
   0x9   : > { %s1740_s17 = scalar_select %p23_p0, %s1680_s11, %s25_s16  }
   0xa   : > { %p1742_p4 = por %p33_p2, %p32_p1  ;;  %p39_p5 = scmp.eq.s32.totalorder %s1727_s13, 0 }
   0xb   : > { %p1420_p6 = scmp.lt.s32.totalorder %s1684_s12, 2  ;;  %s1753_s20 = sand.u32 1, %s1680_s11  }
   0xc   : > { %p1748_p7 = por %p39_p5, %p38_p3  ;;  %s1371_s21 = sshll.u32 %s1753_s20, 6 }
   0xd   : > { %s1389_s22 = sshll.u32 %s1684_s12, 6  ;;  %s118_s26 = scalar_lea.vmem [#allocation2], %s1371_s21 }
   0xe   : > { %s123_s25 = scalar_lea.hbm %s2585_s0, %s1389_s22  ;;  %s126_s27 = sshll.u32 %s118_s26, 4  ;;  %s127_s27 = int_to_ptr.vmem [resolvable:$true] %s126_s27 }
   0xf   : > { %s124_s28 = sshll.u32 %s123_s25, 4  ;;  %p1762_p8 = pnand %p1420_p6, %p1742_p4  ;;  %s125_s28 = int_to_ptr.hbm [resolvable:$true] %s124_s28 }
  0x10   : > { %p1377_p9 = scmp.ge.s32.totalorder %s1684_s12, 1  ;;  %s115_s30 = scalar_lea.sflag [#allocation3], %s1753_s20 }
  0x11   : > { %s1586_s3 = sshra.s32 %s125_s28, 4  ;;  %p1590_p11 = pneg %p1762_p8  ;;  %s1587_s3 = int_to_ptr.hbm [resolvable:$true] %s1586_s3 }
  0x12   : > { %s1588_s4 = scalar_lea.hbm %s1587_s3, 64  ;;  %s1593_s7 = scalar_lea.hbm %s2585_s0, 128 }
  0x13   : > { %p1589_p10 = scmp.ne.s32.totalorder %s1587_s3, %s1588_s4  ;;  %p1594_p0 = scmp.lt.s32.totalorder %s1587_s3, %s2585_s0 }
  0x14   : > { %p1595_p1 = scmp.lt.s32.totalorder %s1593_s7, %s1588_s4 }
  0x15   : > { %p1591_p12 = pnand %p1590_p11, %p1589_p10 }
  0x16   : > { %p1596_p2 = por %p1595_p1, %p1594_p0 }
  0x17   : > { %p1592_p13 = pneg %p1591_p12 }
  0x19   : > { %p1597_p3 = pnand %p1596_p2, %p1592_p13 }
  0x1b   : > { %1600 = shalt.err (!%p1597_p3)
}
  0x1c   : > { %s1686_s15 = smov 128   ;;  %s1687_s16 = smov 8  }
  0x1d   : > { %1416 = dma.hbm_to_vmem [thread:$0]  (!%p1762_p8), %s125_s28, 1024, %s127_s27, %s115_s30, %s1686_s15, %s1686_s15, %s1687_s16  }
  0x1e   : > { %p156_p4 = scmp.lt.s32.totalorder %s1684_s12, 3  ;;  %s1374_s18 = sshll.u32 %s1753_s20, 4 }
  0x1f   : > { %s1390_s21 = sshll.u32 %s1684_s12, 4  ;;  %s140_s26 = scalar_lea.vmem [#allocation4], %s1374_s18 }
  0x20   : > { %p1789_p5 = pnand %p1377_p9, %p156_p4  ;;  %s145_s25 = scalar_lea.hbm %s2586_s1, %s1390_s21 }
  0x21   : > { %s148_s3 = sshll.u32 %s140_s26, 4  ;;  %s146_s4 = sshll.u32 %s145_s25, 4  ;;  %s149_s3 = int_to_ptr.vmem [resolvable:$true] %s148_s3  ;;  %s147_s4 = int_to_ptr.hbm [resolvable:$true] %s146_s4 }
  0x22   : > { %s137_s5 = scalar_lea.sflag [#allocation5], %s1753_s20  ;;  %s1616_s27 = sshra.s32 %s147_s4, 4  ;;  %s1617_s27 = int_to_ptr.hbm [resolvable:$true] %s1616_s27 }
  0x23   : > { %s1618_s28 = scalar_lea.hbm %s1617_s27, 16  ;;  %s1623_s6 = scalar_lea.hbm %s2586_s1, 32 }
  0x24   : > { %p1619_p6 = scmp.ne.s32.totalorder %s1617_s27, %s1618_s28  ;;  %p1624_p12 = scmp.lt.s32.totalorder %s1617_s27, %s2586_s1 }
  0x25   : > { %p1625_p13 = scmp.lt.s32.totalorder %s1623_s6, %s1618_s28 }
  0x26   : > { %p1621_p9 = pnand %p1619_p6, %p1590_p11 }
  0x27   : > { %p1626_p0 = por %p1625_p13, %p1624_p12 }
  0x28   : > { %p1622_p10 = pneg %p1621_p9 }
  0x2a   : > { %p1627_p1 = pnand %p1626_p0, %p1622_p10 }
  0x2c   : > { %1630 = shalt.err (!%p1627_p1)
}
  0x2d   : > { %1419 = dma.hbm_to_vmem [thread:$0]  (!%p1762_p8), %s147_s4, 256, %s149_s3, %s137_s5, %s1686_s15, %s1686_s15, %s1687_s16  }
  0x2e   : > { %160 = sbr.rel (%p1789_p5) target bundleno = 2118 (0x846), region = 28  ;;  %s162_s20 = sand.u32 (!%p1789_p5), 1, %s1676_s10  }
  0x2f   : > { %s1378_s9 = sshll.u32 (!%p1789_p5), %s162_s20, 6  ;;  %s163_s18 = scalar_lea.sflag (!%p1789_p5), [#allocation3], %s162_s20 }
  0x30   : > { %s166_s21 = scalar_lea.vmem (!%p1789_p5), [#allocation2], %s1378_s9 }
  0x33   : > { %1663 = dma.done.wait (%p1748_p7), %s163_s18, 1024  }
  0x34   : > { %1665 = vsyncadd (%p1748_p7), %s163_s18, 4294966272  ;;  %s1379_s29 = sshll.u32 %s162_s20, 4  ;;  %s173_s23 = scalar_lea.sflag [#allocation5], %s162_s20 }
  0x35   : > { %s1818_s24 = scalar_lea.vmem [#allocation4], %s1379_s29 }
  0x36   : > { %1667 = dma.done.wait (%p1748_p7), %s173_s23, 256  }
  0x37   : > { %1669 = vsyncadd (%p1748_p7), %s173_s23, 4294967040  ;;  %v208_v0 = vld [vmem:[%s166_s21] sm:$0xff]  ;;  %v210_v1 = vld [vmem:[%s166_s21 + $0x10] sm:$0xff]  ;;  %v1688_v43 = vmov 0.0   ;;  %s1689_s19 = smov 16   ;;  %vm478_vm14 = vcmask 1047680  }
  0x38   : > { %v212_v2 = vld [vmem:[%s166_s21 + $0x20] sm:$0xff]  ;;  %v218_v3 = vmax.f32 %v208_v0, %v210_v1  ;;  %v209_v4 = vld [vmem:[%s166_s21 + $0x8] sm:$0xff]  ;;  %v211_v5 = vld [vmem:[%s166_s21 + $0x18] sm:$0xff]  ;;  %s1690_s15 = smov 113   ;;  %s1691_s16 = smov 127  }
  0x39   : > { %v214_v6 = vld [vmem:[%s166_s21 + $0x30] sm:$0xff]  ;;  %v213_v7 = vld [vmem:[%s166_s21 + $0x28] sm:$0xff]  ;;  %v219_v8 = vmax.f32 %v209_v4, %v211_v5  ;;  %v215_v10 = vld [vmem:[%s166_s21 + $0x38] sm:$0xff]  ;;  %p202_p7 = scmp.lt.s32.totalorder %s1727_s13, 1 }
  0x3a   : > { %v220_v9 = vmax.f32 %v218_v3, %v212_v2  ;;  %v216_v30 = vld [vmem:[%s1818_s24] sm:$0xff]  ;;  %v217_v31 = vld [vmem:[%s1818_s24 + $0x8] sm:$0xff] }
  0x3b   : > { %v221_v11 = vmax.f32 %v219_v8, %v213_v7  ;;  %vm284_vm0 = vcmp.gt.s32.totalorder %v216_v30, 0  ;;  %vm286_vm1 = vcmp.gt.s32.totalorder %v217_v31, 0  ;;  %s2597_s13 = smov (!%p202_p7, %s1727_s13), 1 }
  0x3c   : > { %v222_v12 = vmax.f32 %v220_v9, %v214_v6  ;;  %v285_v33 = vsel %vm284_vm0, %v216_v30, 0  ;;  %v287_v34 = vsel %vm286_vm1, %v217_v31, 0  ;;  %s1380_s12 = sshll.u32 %s2597_s13, 3 }
  0x3d   : > { %v223_v13 = vmax.f32 %v221_v11, %v215_v10  ;;  %vm288_vm2 = vcmp.lt.s32.totalorder %v285_v33, 3  ;;  %vm290_vm3 = vcmp.lt.s32.totalorder %v287_v34, 3  ;;  %s205_s8 = scalar_lea.vmem %s2587_s2, %s1380_s12 }
  0x3e   : > { %v224_v14 = vsub.f32 %v208_v0, %v222_v12  ;;  %v230_v15 = vsub.f32 %v210_v1, %v222_v12  ;;  %v236_v16 = vsub.f32 %v212_v2, %v222_v12  ;;  %v242_v17 = vsub.f32 %v214_v6, %v222_v12 }
  0x3f   : > { %v225_v18 = vsub.f32 %v209_v4, %v223_v13  ;;  %v231_v19 = vsub.f32 %v211_v5, %v223_v13  ;;  %v237_v23 = vsub.f32 %v213_v7, %v223_v13  ;;  %v243_v26 = vsub.f32 %v215_v10, %v223_v13 }
  0x40   : > { %v226_v20 = vmul.f32 1.442695, %v224_v14  ;;  %v232_v21 = vmul.f32 1.442695, %v230_v15  ;;  %v238_v22 = vmul.f32 1.442695, %v236_v16 }
  0x41   : > { %v244_v24 = vmul.f32 1.442695, %v242_v17  ;;  %v228_v25 = vmul.f32 1.442695, %v225_v18  ;;  %v234_v27 = vmul.f32 1.442695, %v231_v19 }
  0x42   : > { %1560 = vpow2.f32 %v226_v20  ;;  %v240_v28 = vmul.f32 1.442695, %v237_v23  ;;  %v246_v29 = vmul.f32 1.442695, %v243_v26  ;;  %v289_v38 = vsel %vm288_vm2, %v285_v33, 3 }
  0x43   : > { %1562 = vpow2.f32 %v232_v21  ;;  %v291_v39 = vsel %vm290_vm3, %v287_v34, 3  ;;  %vm292_vm4 = vcmp.eq.s32.totalorder %v289_v38, 1 }
  0x44   : > { %1564 = vpow2.f32 %v238_v22  ;;  %vm293_vm5 = vcmp.eq.s32.totalorder %v291_v39, 1  ;;  %v1827_v44 = vsel %vm292_vm4, 1.0, %v1688_v43  ;;  %vm308_vm4 = vcmask 130048  }
  0x45   : > { %1566 = vpow2.f32 %v244_v24  ;;  %v1830_v45 = vsel %vm293_vm5, 1.0, %v1688_v43 }
  0x46   : > { %1568 = vpow2.f32 %v228_v25  ;;  %v1460_v47 = vpack.i.bf16 %v1830_v45, %v1827_v44 }
  0x47   : > { %1570 = vpow2.f32 %v234_v27 }
  0x48   : > { %v1561_v32 = vpop.eup %1560  ;;  %1572 = vpow2.f32 %v240_v28  ;;  %1461 = vrot.lane.b32.xlu1 %v1460_v47, %s1689_s19 }
  0x49   : > { %v1563_v35 = vpop.eup %1562  ;;  %1574 = vpow2.f32 %v246_v29 }
  0x4a   : > { %v1565_v36 = vpop.eup %1564  ;;  %v248_v37 = vadd.f32 %v1563_v35, %v1561_v32  ;;  %v450_v32 = vlaneseq }
  0x4b   : > { %v1567_v40 = vpop.eup %1566 }
  0x4c   : > { %v1569_v41 = vpop.eup %1568  ;;  %v250_v42 = vadd.f32 %v1565_v36, %v248_v37  ;;  %v1868_v33 = vshrl.u32 %v450_v32, 7  ;;  %v833_v36 = vrot.slane %v1827_v44, 7  ;;  %v834_v37 = vrot.slane %v1830_v45, 7 }
  0x4d   : > { %v1571_v46 = vpop.eup %1570 }
  0x4e   : > { %v1573_v48 = vpop.eup %1572  ;;  %v252_v49 = vadd.f32 %v1567_v40, %v250_v42  ;;  %v249_v50 = vadd.f32 %v1571_v46, %v1569_v41  ;;  %vm455_vm15 = vcmp.lt.s32.totalorder %v1868_v33, 1  ;;  %v1876_v40 = vadd.s32 8, %v1868_v33 }
  0x4f   : > { %v1575_v51 = vpop.eup %1574  ;;  %v836_v41 = vsel %vm455_vm15, %v834_v37, %v833_v36  ;;  %v841_v42 = vrot.slane %v1827_v44, 1  ;;  %vm471_vm0 = vcmp.lt.s32.totalorder %v1868_v33, 7 }
  0x50   : > { %1576 = vrcp.f32 %v252_v49  ;;  %v251_v52 = vadd.f32 %v1573_v48, %v249_v50  ;;  %v265_v56 = vand.u32 2147483648, %v252_v49  ;;  %vm259_vm6 = vweird.f32 %v252_v49 }
  0x51   : > { %v263_v58 = vand.u32 2147483647, %v252_v49  ;;  %vm458_vm1 = vcmp.ge.s32.totalorder %v1876_v40, 15  ;;  %v835_v50 = vsel %vm455_vm15, %v833_v36, %v834_v37 }
  0x52   : > { %v253_v53 = vadd.f32 %v1575_v51, %v251_v52  ;;  %v266_v61 = vor.u32 1.1754944e-38, %v265_v56  ;;  %v837_v51 = vsel %vm455_vm15, inf, %v836_v41 }
  0x53   : > { %vm264_vm9 = vcmp.eq.f32.partialorder %v263_v58, 8.507059e+37 }
  0x54   : > { %1578 = vrcp.f32 %v253_v53  ;;  %v280_v0 = vand.u32 2147483648, %v253_v53  ;;  %vm274_vm10 = vweird.f32 %v253_v53  ;;  %v278_v2 = vand.u32 2147483647, %v253_v53 }
  0x56   : > { %v1577_v54 = vpop.eup %1576  ;;  %v281_v7 = vor.u32 1.1754944e-38, %v280_v0  ;;  %vm279_vm13 = vcmp.eq.f32.partialorder %v278_v2, 8.507059e+37 }
  0x57   : > { %v255_v55 = vmul.f32 %v1577_v54, %v252_v49  ;;  %vm260_vm7 = vweird.f32 %v1577_v54  ;;  %v1885_v49 = vand.u32 127, %v450_v32 }
  0x58   : > { %vm261_vm8 = vmor %vm259_vm6, %vm260_vm7  ;;  %vm1255_vm7 = vcmp.eq.s32.totalorder %v1868_v33, 0 }
  0x59   : > { %v256_v57 = vsub.f32 1.0, %v255_v55  ;;  %vm459_vm2 = vcmp.lt.s32.totalorder %v1885_v49, 1  ;;  %vm460_vm3 = vcmp.ge.s32.totalorder %v1885_v49, 15 }
  0x5a   : > { %v1579_v59 = vpop.eup %1578 }
  0x5b   : > { %v257_v60 = vmul.f32 %v1577_v54, %v256_v57  ;;  %v270_v62 = vmul.f32 %v1579_v59, %v253_v53  ;;  %vm275_vm11 = vweird.f32 %v1579_v59 }
  0x5c   : > { %vm276_vm12 = vmor %vm274_vm10, %vm275_vm11  ;;  %vm1264_vm10 = vcmp.eq.s32.totalorder %v1868_v33, 3  ;;  %vm1267_vm11 = vcmp.eq.s32.totalorder %v1868_v33, 4 }
  0x5d   : > { %v258_v63 = vadd.f32 %v1577_v54, %v257_v60  ;;  %v271_v1 = vsub.f32 1.0, %v270_v62  ;;  %v840_v60 = vmin.f32 %v835_v50, %v1830_v45 }
  0x5f   : > { %v262_v3 = vsel %vm261_vm8, %v1577_v54, %v258_v63  ;;  %v272_v5 = vmul.f32 %v1579_v59, %v271_v1  ;;  %vm1258_vm8 = vcmp.eq.s32.totalorder %v1868_v33, 1 }
  0x60   : > { %v267_v4 = vsel %vm264_vm9, %v266_v61, %v262_v3  ;;  %vm1261_vm9 = vcmp.eq.s32.totalorder %v1868_v33, 2 }
  0x61   : > { %v1835_v6 = vmul.f32 %v1563_v35, %v267_v4  ;;  %v273_v8 = vadd.f32 %v1579_v59, %v272_v5 }
  0x63   : > { %479 = vrot.lane.b32.xlu0 %v1835_v6, %s1689_s19  ;;  %v277_v9 = vsel %vm276_vm12, %v1579_v59, %v273_v8  ;;  %v461_v39 = vrot.slane %v1835_v6, 7  ;;  %v469_v55 = vrot.slane %v1835_v6, 1  ;;  %v839_v59 = vmin.f32 %v837_v51, %v1827_v44 }
  0x64   : > { %v282_v10 = vsel %vm279_vm13, %v281_v7, %v277_v9  ;;  %vm1270_vm12 = vcmp.eq.s32.totalorder %v1868_v33, 5  ;;  %vm1273_vm13 = vcmp.eq.s32.totalorder %v1868_v33, 6 }
  0x65   : > { %v1839_v11 = vmul.f32 %v1571_v46, %v282_v10  ;;  %v842_v46 = vrot.slane %v1830_v45, 1 }
  0x67   : > { %v462_v38 = vrot.slane %v1839_v11, 7  ;;  %v844_v52 = vsel %vm471_vm0, %v842_v46, %v841_v42  ;;  %v470_v53 = vrot.slane %v1839_v11, 1  ;;  %v843_v61 = vsel %vm471_vm0, %v841_v42, %v842_v46 }
  0x68   : > { %v846_v0 = vsel %vm458_vm1, inf, %v844_v52  ;;  %v847_v10 = vmin.f32 %v839_v59, %v843_v61 }
  0x69   : > { %v464_v47 = vsel %vm455_vm15, %v462_v38, %v461_v39  ;;  %v472_v2 = vsel %vm471_vm0, %v469_v55, %v470_v53 }
  0x6a   : > { %v465_v54 = vsel %vm455_vm15, inf, %v464_v47 }
  0x6b   : > { %482 = vrot.lane.b32.xlu0 %v1839_v11, %s1689_s19  ;;  %v467_v1 = vmin.f32 %v465_v54, %v1835_v6 }
  0xba   : > { %v1462_v14 = vpop.permute.xlu1 %1461 }
  0xbb   : > { %v1464_v15 = vunpack.i.h.bf16 %v1462_v14  ;;  %v1463_v16 = vunpack.i.l.bf16 %v1462_v14  ;;  %v476_v14 = vmin.f32 %v467_v1, %v472_v2 }
  0xbd   : > { %v851_v19 = vsel %vm478_vm14, %v1463_v16, %v1827_v44  ;;  %v854_v20 = vsel %vm478_vm14, %v1464_v15, %v1830_v45  ;;  %v463_v16 = vsel %vm455_vm15, %v461_v39, %v462_v38 }
  0xbe   : > { %v1465_v21 = vpack.i.bf16 %v854_v20, %v851_v19  ;;  %v473_v20 = vsel %vm471_vm0, %v470_v53, %v469_v55 }
  0xd5   : > { %v480_v12 = vpop.permute.xlu0 %479 }
  0xd6   : > { %v481_v13 = vsel %vm478_vm14, %v480_v12, %v1835_v6  ;;  %v848_v12 = vmin.f32 %v840_v60, %v846_v0 }
  0xd7   : > { %485 = vrot.lane.b32.xlu1 %v481_v13, %s1689_s19 }
  0xdd   : > { %v483_v17 = vpop.permute.xlu0 %482 }
  0xde   : > { %v484_v18 = vsel %vm478_vm14, %v483_v17, %v1839_v11 }
  0xdf   : > { %487 = vrot.lane.b32.xlu2 %v484_v18, %s1689_s19 }
  0xe7   : > { %1466 = vrot.lane.b32.xlu2 %v1465_v21, %s1689_s19 }
 0x139   : > { %v488_v22 = vpop.permute.xlu2 %487 }
 0x13a   : > { %v490_v23 = vsel %vm478_vm14, %v488_v22, %v1839_v11 }
 0x13b   : > { %495 = vrot.lane.b32.xlu1 %v490_v23, %s1690_s15 }
 0x141   : > { %v1467_v24 = vpop.permute.xlu2 %1466 }
 0x142   : > { %v1469_v25 = vunpack.i.h.bf16 %v1467_v24  ;;  %v1468_v26 = vunpack.i.l.bf16 %v1467_v24 }
 0x144   : > { %v859_v27 = vsel %vm478_vm14, %v1468_v26, %v1827_v44  ;;  %v860_v28 = vsel %vm478_vm14, %v1469_v25, %v1830_v45  ;;  %v468_v26 = vmin.f32 %v463_v16, %v1839_v11 }
 0x145   : > { %v1470_v29 = vpack.i.bf16 %v860_v28, %v859_v27  ;;  %v475_v27 = vsel %vm458_vm1, inf, %v473_v20 }
 0x146   : > { %v477_v32 = vmin.f32 %v468_v26, %v475_v27 }
 0x147   : > { %1471 = vrot.lane.b32.xlu1 %v1470_v29, %s1690_s15 }
 0x149   : > { %v486_v30 = vpop.permute.xlu1 %485 }
 0x14a   : > { %v489_v31 = vsel %vm478_vm14, %v486_v30, %v1835_v6 }
 0x14b   : > { %493 = vrot.lane.b32.xlu0 %v489_v31, %s1690_s15  ;;  %503 = vrot.lane.b32.xlu2 %v489_v31, %s1691_s16 }
 0x153   : > { %505 = vrot.lane.b32.xlu0 %v490_v23, %s1691_s16  ;;  %1476 = vrot.lane.b32.xlu2 %v1470_v29, %s1691_s16 }
 0x1a5   : > { %v504_v34 = vpop.permute.xlu2 %503 }
 0x1a6   : > { %v509_v21 = vsel %vm460_vm3, inf, %v504_v34 }
 0x1ad   : > { %v496_v35 = vpop.permute.xlu1 %495  ;;  %v1477_v48 = vpop.permute.xlu2 %1476 }
 0x1ae   : > { %v1479_v56 = vunpack.i.h.bf16 %v1477_v48  ;;  %v1478_v57 = vunpack.i.l.bf16 %v1477_v48  ;;  %v500_v22 = vsel %vm459_vm2, inf, %v496_v35 }
 0x1af   : > { %v502_v28 = vmin.f32 %v500_v22, %v1839_v11 }
 0x1b0   : > { %v880_v5 = vsel %vm460_vm3, inf, %v1479_v56  ;;  %v879_v7 = vsel %vm460_vm3, inf, %v1478_v57 }
 0x1b9   : > { %v1472_v58 = vpop.permute.xlu1 %1471 }
 0x1ba   : > { %v1474_v62 = vunpack.i.h.bf16 %v1472_v58  ;;  %v1473_v63 = vunpack.i.l.bf16 %v1472_v58 }
 0x1bc   : > { %v870_v3 = vsel %vm459_vm2, inf, %v1474_v62  ;;  %v869_v4 = vsel %vm459_vm2, inf, %v1473_v63 }
 0x1bd   : > { %v872_v8 = vmin.f32 %v870_v3, %v1830_v45  ;;  %v871_v9 = vmin.f32 %v869_v4, %v1827_v44  ;;  %v494_v13 = vpop.permute.xlu0 %493 }
 0x1be   : > { %v499_v15 = vsel %vm459_vm2, inf, %v494_v13 }
 0x1bf   : > { %v881_v17 = vmin.f32 %v871_v9, %v879_v7  ;;  %v882_v18 = vmin.f32 %v872_v8, %v880_v5  ;;  %v501_v19 = vmin.f32 %v499_v15, %v1835_v6 }
 0x1c1   : > { %v1930_v23 = vmin.f32 %v847_v10, %v881_v17  ;;  %v1932_v24 = vmin.f32 %v848_v12, %v882_v18  ;;  %v511_v25 = vmin.f32 %v501_v19, %v509_v21 }
 0x1c3   : > { %v1938_v29 = vmin.f32 %v476_v14, %v511_v25  ;;  %v1480_v30 = vpack.i.bf16 %v1932_v24, %v1930_v23  ;;  %v939_v18 = vrot.slane %v1930_v23, 7  ;;  %v940_v19 = vrot.slane %v1932_v24, 7 }
 0x1c5   : > { %1481 = vrot.lane.b32.xlu2 %v1480_v30, %s1689_s19  ;;  %v506_v31 = vpop.permute.xlu0 %505  ;;  %515 = vrot.lane.b32.xlu0 %v1938_v29, %s1689_s19  ;;  %v569_v63 = vrot.slane %v1938_v29, 7  ;;  %v577_v3 = vrot.slane %v1938_v29, 1  ;;  %v947_v30 = vrot.slane %v1930_v23, 1 }
 0x1c6   : > { %v510_v34 = vsel %vm460_vm3, inf, %v506_v31  ;;  %v948_v31 = vrot.slane %v1932_v24, 1 }
 0x1c7   : > { %v512_v35 = vmin.f32 %v502_v28, %v510_v34 }
 0x1c9   : > { %v1947_v36 = vmin.f32 %v477_v32, %v512_v35  ;;  %v942_v35 = vsel %vm455_vm15, %v940_v19, %v939_v18 }
 0x1cb   : > { %518 = vrot.lane.b32.xlu1 %v1947_v36, %s1689_s19  ;;  %v570_v62 = vrot.slane %v1947_v36, 7  ;;  %v578_v2 = vrot.slane %v1947_v36, 1 }
 0x1cd   : > { %v572_v0 = vsel %vm455_vm15, %v570_v62, %v569_v63  ;;  %v579_v9 = vsel %vm471_vm0, %v577_v3, %v578_v2  ;;  %v571_v14 = vsel %vm455_vm15, %v569_v63, %v570_v62  ;;  %v580_v15 = vsel %vm471_vm0, %v578_v2, %v577_v3 }
 0x1ce   : > { %v573_v1 = vsel %vm455_vm15, inf, %v572_v0  ;;  %v576_v25 = vmin.f32 %v571_v14, %v1947_v36  ;;  %v582_v28 = vsel %vm458_vm1, inf, %v580_v15 }
 0x1cf   : > { %v575_v7 = vmin.f32 %v573_v1, %v1938_v29 }
 0x1d1   : > { %v583_v21 = vmin.f32 %v575_v7, %v579_v9 }
 0x21f   : > { %v1482_v37 = vpop.permute.xlu2 %1481 }
 0x220   : > { %v1484_v38 = vunpack.i.h.bf16 %v1482_v37  ;;  %v1483_v39 = vunpack.i.l.bf16 %v1482_v37 }
 0x222   : > { %v887_v41 = vsel %vm478_vm14, %v1483_v39, %v1930_v23  ;;  %v890_v42 = vsel %vm478_vm14, %v1484_v38, %v1932_v24 }
 0x223   : > { %v1485_v46 = vpack.i.bf16 %v890_v42, %v887_v41  ;;  %v584_v42 = vmin.f32 %v576_v25, %v582_v28 }
 0x225   : > { %1486 = vrot.lane.b32.xlu2 %v1485_v46, %s1689_s19 }
 0x237   : > { %v516_v47 = vpop.permute.xlu0 %515 }
 0x238   : > { %v517_v48 = vsel %vm478_vm14, %v516_v47, %v1938_v29  ;;  %v941_v47 = vsel %vm455_vm15, %v939_v18, %v940_v19 }
 0x239   : > { %521 = vrot.lane.b32.xlu0 %v517_v48, %s1689_s19 }
 0x23d   : > { %v519_v50 = vpop.permute.xlu1 %518 }
 0x23e   : > { %v520_v51 = vsel %vm478_vm14, %v519_v50, %v1947_v36 }
 0x23f   : > { %523 = vrot.lane.b32.xlu1 %v520_v51, %s1689_s19 }
 0x27f   : > { %v1487_v52 = vpop.permute.xlu2 %1486 }
 0x280   : > { %v1489_v54 = vunpack.i.h.bf16 %v1487_v52  ;;  %v1488_v55 = vunpack.i.l.bf16 %v1487_v52  ;;  %v943_v52 = vsel %vm455_vm15, inf, %v942_v35 }
 0x282   : > { %v895_v57 = vsel %vm478_vm14, %v1488_v55, %v1930_v23  ;;  %v896_v58 = vsel %vm478_vm14, %v1489_v54, %v1932_v24 }
 0x283   : > { %v1495_v61 = vpack.i.bf16 %v896_v58, %v895_v57 }
 0x2ab   : > { %v522_v53 = vpop.permute.xlu0 %521 }
 0x2ac   : > { %v525_v56 = vsel %vm478_vm14, %v522_v53, %v1938_v29  ;;  %v950_v53 = vsel %vm471_vm0, %v948_v31, %v947_v30 }
 0x2ad   : > { %539 = vrot.lane.b32.xlu2 %v525_v56, %s1691_s16  ;;  %529 = vrot.lane.b32.xlu0 %v525_v56, %s1690_s15  ;;  %v952_v62 = vsel %vm458_vm1, inf, %v950_v53 }
 0x2b1   : > { %v524_v59 = vpop.permute.xlu1 %523 }
 0x2b2   : > { %v526_v60 = vsel %vm478_vm14, %v524_v59, %v1947_v36 }
 0x2b3   : > { %531 = vrot.lane.b32.xlu1 %v526_v60, %s1690_s15 }
 0x2b5   : > { %1496 = vrot.lane.b32.xlu2 %v1495_v61, %s1691_s16  ;;  %541 = vrot.lane.b32.xlu0 %v526_v60, %s1691_s16  ;;  %v945_v60 = vmin.f32 %v943_v52, %v1930_v23 }
 0x2bb   : > { %1491 = vrot.lane.b32.xlu1 %v1495_v61, %s1690_s15  ;;  %v946_v61 = vmin.f32 %v941_v47, %v1932_v24 }
 0x2bd   : > { %v954_v15 = vmin.f32 %v946_v61, %v952_v62 }
 0x307   : > { %v540_v4 = vpop.permute.xlu2 %539 }
 0x308   : > { %v545_v16 = vsel %vm460_vm3, -inf, %v540_v4  ;;  %v589_v17 = vsel %vm460_vm3, inf, %v540_v4 }
 0x30f   : > { %v1497_v48 = vpop.permute.xlu2 %1496 }
 0x310   : > { %v1499_v59 = vunpack.i.h.bf16 %v1497_v48  ;;  %v1498_v9 = vunpack.i.l.bf16 %v1497_v48 }
 0x312   : > { %v960_v25 = vsel %vm460_vm3, inf, %v1499_v59  ;;  %v959_v35 = vsel %vm460_vm3, inf, %v1498_v9 }
 0x31f   : > { %v530_v5 = vpop.permute.xlu0 %529 }
 0x320   : > { %v535_v8 = vsel %vm459_vm2, -inf, %v530_v5  ;;  %v585_v10 = vsel %vm459_vm2, inf, %v530_v5 }
 0x321   : > { %v537_v12 = vmax.f32 %v535_v8, %v1938_v29  ;;  %v587_v13 = vmin.f32 %v585_v10, %v1938_v29 }
 0x323   : > { %v547_v20 = vmax.f32 %v537_v12, %v545_v16  ;;  %v591_v22 = vmin.f32 %v587_v13, %v589_v17  ;;  %v949_v12 = vsel %vm471_vm0, %v947_v30, %v948_v31  ;;  %v915_v30 = vsel %vm460_vm3, -inf, %v1498_v9 }
 0x325   : > { %v2004_v26 = vmin.f32 %v583_v21, %v591_v22  ;;  %v532_v27 = vpop.permute.xlu1 %531  ;;  %v549_v54 = vrot.slane %v547_v20, 7  ;;  %v557_v55 = vrot.slane %v547_v20, 1  ;;  %v916_v22 = vsel %vm460_vm3, -inf, %v1499_v59 }
 0x326   : > { %v536_v32 = vsel %vm459_vm2, -inf, %v532_v27  ;;  %v586_v34 = vsel %vm459_vm2, inf, %v532_v27 }
 0x327   : > { %v538_v37 = vmax.f32 %v536_v32, %v1947_v36  ;;  %v588_v38 = vmin.f32 %v586_v34, %v1947_v36  ;;  %v542_v39 = vpop.permute.xlu0 %541  ;;  %595 = vrot.lane.b32.xlu0 %v2004_v26, %s1689_s19 }
 0x328   : > { %v546_v41 = vsel %vm460_vm3, -inf, %v542_v39  ;;  %v590_v46 = vsel %vm460_vm3, inf, %v542_v39 }
 0x329   : > { %v548_v50 = vmax.f32 %v538_v37, %v546_v41  ;;  %v592_v51 = vmin.f32 %v588_v38, %v590_v46  ;;  %v953_v38 = vmin.f32 %v945_v60, %v949_v12 }
 0x32b   : > { %v550_v56 = vrot.slane %v548_v50, 7  ;;  %v558_v57 = vrot.slane %v548_v50, 1  ;;  %v2030_v58 = vmin.f32 %v584_v42, %v592_v51 }
 0x32d   : > { %v551_v63 = vsel %vm455_vm15, %v549_v54, %v550_v56  ;;  %v552_v0 = vsel %vm455_vm15, %v550_v56, %v549_v54  ;;  %v559_v1 = vsel %vm471_vm0, %v557_v55, %v558_v57  ;;  %v560_v2 = vsel %vm471_vm0, %v558_v57, %v557_v55  ;;  %v1492_v3 = vpop.permute.xlu1 %1491  ;;  %598 = vrot.lane.b32.xlu1 %v2030_v58, %s1689_s19 }
 0x32e   : > { %v553_v4 = vsel %vm455_vm15, -inf, %v552_v0  ;;  %v556_v5 = vmax.f32 %v551_v63, %v548_v50  ;;  %v562_v7 = vsel %vm458_vm1, -inf, %v560_v2  ;;  %v1494_v8 = vunpack.i.h.bf16 %v1492_v3 }
 0x32f   : > { %v555_v10 = vmax.f32 %v553_v4, %v547_v20  ;;  %v1493_v13 = vunpack.i.l.bf16 %v1492_v3 }
 0x330   : > { %v2052_v14 = vmax.f32 %v556_v5, %v562_v7  ;;  %v906_v16 = vsel %vm459_vm2, -inf, %v1494_v8  ;;  %v956_v17 = vsel %vm459_vm2, inf, %v1494_v8 }
 0x331   : > { %v2058_v18 = vmax.f32 %v555_v10, %v559_v1  ;;  %v908_v19 = vmax.f32 %v906_v16, %v1932_v24  ;;  %v958_v21 = vmin.f32 %v956_v17, %v1932_v24  ;;  %v905_v20 = vsel %vm459_vm2, -inf, %v1493_v13 }
 0x332   : > { %v907_v27 = vmax.f32 %v905_v20, %v1930_v23  ;;  %v955_v28 = vsel %vm459_vm2, inf, %v1493_v13 }
 0x333   : > { %v918_v31 = vmax.f32 %v908_v19, %v916_v22  ;;  %v962_v32 = vmin.f32 %v958_v21, %v960_v25  ;;  %v957_v34 = vmin.f32 %v955_v28, %v1930_v23  ;;  %v658_v25 = vrot.slane %v2030_v58, 7 }
 0x334   : > { %v917_v37 = vmax.f32 %v907_v27, %v915_v30  ;;  %v657_v27 = vrot.slane %v2004_v26, 7 }
 0x335   : > { %v920_v39 = vrot.slane %v918_v31, 7  ;;  %v2076_v41 = vmin.f32 %v954_v15, %v962_v32  ;;  %v961_v42 = vmin.f32 %v957_v34, %v959_v35  ;;  %v928_v47 = vrot.slane %v918_v31, 1 }
 0x336   : > { %v919_v46 = vrot.slane %v917_v37, 7  ;;  %v927_v48 = vrot.slane %v917_v37, 1  ;;  %v660_v28 = vsel %vm455_vm15, %v658_v25, %v657_v27 }
 0x337   : > { %v2078_v50 = vmin.f32 %v953_v38, %v961_v42  ;;  %v661_v30 = vsel %vm455_vm15, inf, %v660_v28 }
 0x338   : > { %v921_v51 = vsel %vm455_vm15, %v919_v46, %v920_v39  ;;  %v922_v52 = vsel %vm455_vm15, %v920_v39, %v919_v46  ;;  %v929_v57 = vsel %vm471_vm0, %v927_v48, %v928_v47  ;;  %v930_v59 = vsel %vm471_vm0, %v928_v47, %v927_v48 }
 0x339   : > { %v923_v53 = vsel %vm455_vm15, -inf, %v922_v52  ;;  %v926_v54 = vmax.f32 %v921_v51, %v918_v31  ;;  %v1500_v55 = vpack.i.bf16 %v2076_v41, %v2078_v50  ;;  %v932_v60 = vsel %vm458_vm1, -inf, %v930_v59 }
 0x33a   : > { %v925_v56 = vmax.f32 %v923_v53, %v917_v37  ;;  %v666_v31 = vrot.slane %v2030_v58, 1  ;;  %v663_v32 = vmin.f32 %v661_v30, %v2004_v26  ;;  %v665_v37 = vrot.slane %v2004_v26, 1 }
 0x33b   : > { %1501 = vrot.lane.b32.xlu2 %v1500_v55, %s1689_s19  ;;  %v2097_v62 = vmax.f32 %v926_v54, %v932_v60  ;;  %v659_v48 = vsel %vm455_vm15, %v657_v27, %v658_v25  ;;  %v1028_v59 = vrot.slane %v2076_v41, 7 }
 0x33c   : > { %v2095_v61 = vmax.f32 %v925_v56, %v929_v57  ;;  %v667_v46 = vsel %vm471_vm0, %v665_v37, %v666_v31  ;;  %v668_v54 = vsel %vm471_vm0, %v666_v31, %v665_v37  ;;  %v1027_v57 = vrot.slane %v2078_v50, 7 }
 0x33d   : > { %v671_v53 = vmin.f32 %v663_v32, %v667_v46 }
 0x395   : > { %v1502_v63 = vpop.permute.xlu2 %1501 }
 0x396   : > { %v1504_v0 = vunpack.i.h.bf16 %v1502_v63  ;;  %v1503_v1 = vunpack.i.l.bf16 %v1502_v63 }
 0x398   : > { %v967_v2 = vsel %vm478_vm14, %v1503_v1, %v2078_v50  ;;  %v970_v3 = vsel %vm478_vm14, %v1504_v0, %v2076_v41  ;;  %v664_v0 = vmin.f32 %v659_v48, %v2030_v58  ;;  %v1035_v1 = vrot.slane %v2078_v50, 1 }
 0x399   : > { %v1505_v4 = vpack.i.bf16 %v970_v3, %v967_v2  ;;  %v596_v5 = vpop.permute.xlu0 %595  ;;  %v1036_v2 = vrot.slane %v2076_v41, 1 }
 0x39a   : > { %v597_v7 = vsel %vm478_vm14, %v596_v5, %v2004_v26  ;;  %v670_v5 = vsel %vm458_vm1, inf, %v668_v54 }
 0x39b   : > { %1506 = vrot.lane.b32.xlu2 %v1505_v4, %s1689_s19  ;;  %601 = vrot.lane.b32.xlu0 %v597_v7, %s1689_s19  ;;  %v1037_v37 = vsel %vm471_vm0, %v1035_v1, %v1036_v2 }
 0x39f   : > { %v599_v8 = vpop.permute.xlu1 %598 }
 0x3a0   : > { %v600_v9 = vsel %vm478_vm14, %v599_v8, %v2030_v58 }
 0x3a1   : > { %603 = vrot.lane.b32.xlu1 %v600_v9, %s1689_s19 }
 0x3f5   : > { %v1507_v10 = vpop.permute.xlu2 %1506 }
 0x3f6   : > { %v1509_v13 = vunpack.i.h.bf16 %v1507_v10  ;;  %v1508_v15 = vunpack.i.l.bf16 %v1507_v10  ;;  %v1029_v10 = vsel %vm455_vm15, %v1027_v57, %v1028_v59 }
 0x3f7   : > { %v1034_v27 = vmin.f32 %v1029_v10, %v2076_v41 }
 0x3f8   : > { %v975_v17 = vsel %vm478_vm14, %v1508_v15, %v2078_v50  ;;  %v976_v19 = vsel %vm478_vm14, %v1509_v13, %v2076_v41 }
 0x3f9   : > { %v1515_v22 = vpack.i.bf16 %v976_v19, %v975_v17  ;;  %v672_v19 = vmin.f32 %v664_v0, %v670_v5 }
 0x40d   : > { %v602_v12 = vpop.permute.xlu0 %601 }
 0x40e   : > { %v605_v16 = vsel %vm478_vm14, %v602_v12, %v2004_v26  ;;  %v1030_v12 = vsel %vm455_vm15, %v1028_v59, %v1027_v57 }
 0x40f   : > { %619 = vrot.lane.b32.xlu2 %v605_v16, %s1691_s16  ;;  %609 = vrot.lane.b32.xlu0 %v605_v16, %s1690_s15  ;;  %v1031_v25 = vsel %vm455_vm15, inf, %v1030_v12 }
 0x410   : > { %v1033_v57 = vmin.f32 %v1031_v25, %v2078_v50 }
 0x413   : > { %v604_v21 = vpop.permute.xlu1 %603 }
 0x414   : > { %v606_v20 = vsel %vm478_vm14, %v604_v21, %v2030_v58 }
 0x415   : > { %611 = vrot.lane.b32.xlu1 %v606_v20, %s1690_s15 }
 0x417   : > { %1516 = vrot.lane.b32.xlu2 %v1515_v22, %s1691_s16  ;;  %621 = vrot.lane.b32.xlu0 %v606_v20, %s1691_s16  ;;  %v1038_v20 = vsel %vm471_vm0, %v1036_v2, %v1035_v1 }
 0x41d   : > { %1511 = vrot.lane.b32.xlu1 %v1515_v22, %s1690_s15 }
 0x469   : > { %v620_v34 = vpop.permute.xlu2 %619 }
 0x46a   : > { %v625_v51 = vsel %vm460_vm3, -inf, %v620_v34  ;;  %v677_v52 = vsel %vm460_vm3, inf, %v620_v34 }
 0x471   : > { %v1517_v16 = vpop.permute.xlu2 %1516 }
 0x472   : > { %v1519_v34 = vunpack.i.h.bf16 %v1517_v16 }
 0x474   : > { %v996_v0 = vsel %vm460_vm3, -inf, %v1519_v34 }
 0x481   : > { %v610_v35 = vpop.permute.xlu0 %609 }
 0x482   : > { %v615_v38 = vsel %vm459_vm2, -inf, %v610_v35  ;;  %v673_v39 = vsel %vm459_vm2, inf, %v610_v35  ;;  %v1518_v35 = vunpack.i.l.bf16 %v1517_v16 }
 0x483   : > { %v617_v42 = vmax.f32 %v615_v38, %v2004_v26  ;;  %v675_v47 = vmin.f32 %v673_v39, %v2004_v26  ;;  %v1040_v38 = vsel %vm458_vm1, inf, %v1038_v20 }
 0x484   : > { %v1042_v59 = vmin.f32 %v1034_v27, %v1040_v38 }
 0x485   : > { %v627_v55 = vmax.f32 %v617_v42, %v625_v51  ;;  %v679_v56 = vmin.f32 %v675_v47, %v677_v52 }
 0x487   : > { %v2151_v60 = vmin.f32 %v671_v53, %v679_v56  ;;  %v612_v63 = vpop.permute.xlu1 %611  ;;  %v629_v22 = vrot.slane %v627_v55, 7  ;;  %v637_v28 = vrot.slane %v627_v55, 1 }
 0x488   : > { %v616_v3 = vsel %vm459_vm2, -inf, %v612_v63  ;;  %v674_v4 = vsel %vm459_vm2, inf, %v612_v63 }
 0x489   : > { %v618_v7 = vmax.f32 %v616_v3, %v2030_v58  ;;  %v676_v8 = vmin.f32 %v674_v4, %v2030_v58  ;;  %v622_v9 = vpop.permute.xlu0 %621  ;;  %683 = vrot.lane.b32.xlu0 %v2151_v60, %s1689_s19 }
 0x48a   : > { %v626_v13 = vsel %vm460_vm3, -inf, %v622_v9  ;;  %v678_v15 = vsel %vm460_vm3, inf, %v622_v9  ;;  %v995_v9 = vsel %vm460_vm3, -inf, %v1518_v35 }
 0x48b   : > { %v628_v17 = vmax.f32 %v618_v7, %v626_v13  ;;  %v680_v21 = vmin.f32 %v676_v8, %v678_v15  ;;  %v1048_v8 = vsel %vm460_vm3, inf, %v1519_v34  ;;  %v566_v34 = vsub.f32 %v1839_v11, %v2052_v14 }
 0x48d   : > { %v630_v30 = vrot.slane %v628_v17, 7  ;;  %v638_v31 = vrot.slane %v628_v17, 1  ;;  %v2179_v32 = vmin.f32 %v672_v19, %v680_v21  ;;  %v1047_v19 = vsel %vm460_vm3, inf, %v1518_v35 }
 0x48e   : > { %v1041_v21 = vmin.f32 %v1033_v57, %v1037_v37 }
 0x48f   : > { %v631_v39 = vsel %vm455_vm15, %v629_v22, %v630_v30  ;;  %v632_v42 = vsel %vm455_vm15, %v630_v30, %v629_v22  ;;  %v639_v46 = vsel %vm471_vm0, %v637_v28, %v638_v31  ;;  %v640_v47 = vsel %vm471_vm0, %v638_v31, %v637_v28  ;;  %v1512_v48 = vpop.permute.xlu1 %1511  ;;  %686 = vrot.lane.b32.xlu1 %v2179_v32, %s1689_s19 }
 0x490   : > { %v633_v51 = vsel %vm455_vm15, -inf, %v632_v42  ;;  %v636_v52 = vmax.f32 %v631_v39, %v628_v17  ;;  %v642_v53 = vsel %vm458_vm1, -inf, %v640_v47  ;;  %v1514_v54 = vunpack.i.h.bf16 %v1512_v48 }
 0x491   : > { %v635_v56 = vmax.f32 %v633_v51, %v627_v55  ;;  %v1513_v63 = vunpack.i.l.bf16 %v1512_v48 }
 0x492   : > { %v644_v1 = vmax.f32 %v636_v52, %v642_v53  ;;  %v986_v2 = vsel %vm459_vm2, -inf, %v1514_v54  ;;  %v1044_v3 = vsel %vm459_vm2, inf, %v1514_v54  ;;  %v565_v52 = vsub.f32 %v1835_v6, %v2058_v18 }
 0x493   : > { %v643_v4 = vmax.f32 %v635_v56, %v639_v46  ;;  %v988_v5 = vmax.f32 %v986_v2, %v2076_v41  ;;  %v1046_v7 = vmin.f32 %v1044_v3, %v2076_v41  ;;  %v985_v55 = vsel %vm459_vm2, -inf, %v1513_v63 }
 0x494   : > { %v987_v10 = vmax.f32 %v985_v55, %v2078_v50  ;;  %v1043_v12 = vsel %vm459_vm2, inf, %v1513_v63  ;;  %v646_v13 = vsub.f32 %v1947_v36, %v644_v1  ;;  %v568_v53 = vmax.f32 %v566_v34, 0.0 }
 0x495   : > { %v998_v15 = vmax.f32 %v988_v5, %v996_v0  ;;  %v1050_v16 = vmin.f32 %v1046_v7, %v1048_v8  ;;  %v1045_v17 = vmin.f32 %v1043_v12, %v2078_v50  ;;  %v645_v56 = vsub.f32 %v1938_v29, %v643_v4 }
 0x496   : > { %v997_v20 = vmax.f32 %v987_v10, %v995_v9  ;;  %v648_v36 = vmax.f32 %v646_v13, 0.0  ;;  %v935_v63 = vsub.f32 %v1827_v44, %v2095_v61  ;;  %v936_v0 = vsub.f32 %v1830_v45, %v2097_v62 }
 0x497   : > { %v1000_v22 = vrot.slane %v998_v15, 7  ;;  %v1008_v25 = vrot.slane %v998_v15, 1  ;;  %v2221_v27 = vmin.f32 %v1042_v59, %v1050_v16  ;;  %v1049_v28 = vmin.f32 %v1045_v17, %v1047_v19 }
 0x498   : > { %v999_v30 = vrot.slane %v997_v20, 7  ;;  %v1007_v31 = vrot.slane %v997_v20, 1  ;;  %v650_v59 = vmul.f32 %v648_v36, %v568_v53  ;;  %v567_v1 = vmax.f32 %v565_v52, 0.0 }
 0x499   : > { %v2225_v38 = vmin.f32 %v1041_v21, %v1049_v28  ;;  %v647_v2 = vmax.f32 %v645_v56, 0.0  ;;  %v937_v8 = vmax.f32 %v935_v63, 0.0  ;;  %v938_v9 = vmax.f32 %v936_v0, 0.0 }
 0x49a   : > { %v1001_v39 = vsel %vm455_vm15, %v999_v30, %v1000_v22  ;;  %v1002_v35 = vsel %vm455_vm15, %v1000_v22, %v999_v30  ;;  %v1009_v37 = vsel %vm471_vm0, %v1007_v31, %v1008_v25  ;;  %v1010_v42 = vsel %vm471_vm0, %v1008_v25, %v1007_v31 }
 0x49b   : > { %v1003_v46 = vsel %vm455_vm15, -inf, %v1002_v35  ;;  %v1006_v47 = vmax.f32 %v1001_v39, %v998_v15  ;;  %v1012_v14 = vsel %vm458_vm1, -inf, %v1010_v42  ;;  %v1520_v48 = vpack.i.bf16 %v2221_v27, %v2225_v38 }
 0x49c   : > { %v1005_v51 = vmax.f32 %v1003_v46, %v997_v20  ;;  %v652_v3 = vsub.f32 %v648_v36, %v650_v59  ;;  %v649_v7 = vmul.f32 %v647_v2, %v567_v1  ;;  %v746_v56 = vrot.slane %v2179_v32, 7 }
 0x49d   : > { %v1014_v54 = vmax.f32 %v1006_v47, %v1012_v14  ;;  %1521 = vrot.lane.b32.xlu2 %v1520_v48, %s1689_s19  ;;  %v754_v0 = vrot.slane %v2179_v32, 1 }
 0x49e   : > { %v1013_v57 = vmax.f32 %v1005_v51, %v1009_v37  ;;  %v654_v55 = vmax.f32 %v652_v3, 0.0  ;;  %v651_v10 = vsub.f32 %v647_v2, %v649_v7  ;;  %v753_v2 = vrot.slane %v2151_v60, 1 }
 0x49f   : > { %v1016_v18 = vsub.f32 %v1932_v24, %v1014_v54 }
 0x4a0   : > { %v1015_v5 = vsub.f32 %v1930_v23, %v1013_v57  ;;  %v2251_v12 = vadd.f32 %v654_v55, %v568_v53  ;;  %v653_v15 = vmax.f32 %v651_v10, 0.0  ;;  %v745_v57 = vrot.slane %v2151_v60, 7 }
 0x4a1   : > { %v1018_v4 = vmax.f32 %v1016_v18, 0.0  ;;  %v755_v7 = vsel %vm471_vm0, %v753_v2, %v754_v0 }
 0x4a2   : > { %v1017_v29 = vmax.f32 %v1015_v5, 0.0  ;;  %v2253_v17 = vadd.f32 %v653_v15, %v567_v1  ;;  %v748_v59 = vsel %vm455_vm15, %v746_v56, %v745_v57  ;;  %v1116_v15 = vrot.slane %v2221_v27, 7 }
 0x4a3   : > { %v1020_v13 = vmul.f32 %v1018_v4, %v938_v9  ;;  %v749_v63 = vsel %vm455_vm15, inf, %v748_v59 }
 0x4a4   : > { %v1019_v61 = vmul.f32 %v1017_v29, %v937_v8  ;;  %v751_v5 = vmin.f32 %v749_v63, %v2151_v60 }
 0x4a5   : > { %v1022_v16 = vsub.f32 %v1018_v4, %v1020_v13  ;;  %v756_v4 = vsel %vm471_vm0, %v754_v0, %v753_v2  ;;  %v1115_v13 = vrot.slane %v2225_v38, 7 }
 0x4a6   : > { %v1021_v62 = vsub.f32 %v1017_v29, %v1019_v61  ;;  %v747_v29 = vsel %vm455_vm15, %v745_v57, %v746_v56 }
 0x4a7   : > { %v1024_v23 = vmax.f32 %v1022_v16, 0.0  ;;  %v759_v16 = vmin.f32 %v751_v5, %v755_v7 }
 0x4a8   : > { %v1023_v19 = vmax.f32 %v1021_v62, 0.0 }
 0x4a9   : > { %v2257_v24 = vadd.f32 %v1024_v23, %v938_v9  ;;  %v752_v23 = vmin.f32 %v747_v29, %v2179_v32 }
 0x4aa   : > { %v2255_v21 = vadd.f32 %v1023_v19, %v937_v8 }
 0x4f7   : > { %v1522_v20 = vpop.permute.xlu2 %1521 }
 0x4f8   : > { %v1524_v22 = vunpack.i.h.bf16 %v1522_v20  ;;  %v1523_v25 = vunpack.i.l.bf16 %v1522_v20 }
 0x4fa   : > { %v1055_v28 = vsel %vm478_vm14, %v1523_v25, %v2225_v38  ;;  %v1058_v30 = vsel %vm478_vm14, %v1524_v22, %v2221_v27  ;;  %v758_v25 = vsel %vm458_vm1, inf, %v756_v4 }
 0x4fb   : > { %v1525_v31 = vpack.i.bf16 %v1058_v30, %v1055_v28  ;;  %v684_v34 = vpop.permute.xlu0 %683  ;;  %v1123_v28 = vrot.slane %v2225_v38, 1  ;;  %v1124_v30 = vrot.slane %v2221_v27, 1 }
 0x4fc   : > { %v685_v36 = vsel %vm478_vm14, %v684_v34, %v2151_v60 }
 0x4fd   : > { %1526 = vrot.lane.b32.xlu2 %v1525_v31, %s1689_s19  ;;  %689 = vrot.lane.b32.xlu0 %v685_v36, %s1689_s19  ;;  %v1118_v36 = vsel %vm455_vm15, %v1116_v15, %v1115_v13 }
 0x501   : > { %v687_v39 = vpop.permute.xlu1 %686 }
 0x502   : > { %v688_v35 = vsel %vm478_vm14, %v687_v39, %v2179_v32 }
 0x503   : > { %691 = vrot.lane.b32.xlu1 %v688_v35, %s1689_s19 }
 0x557   : > { %v1527_v37 = vpop.permute.xlu2 %1526 }
 0x558   : > { %v1529_v46 = vunpack.i.h.bf16 %v1527_v37  ;;  %v1528_v47 = vunpack.i.l.bf16 %v1527_v37 }
 0x55a   : > { %v1063_v48 = vsel %vm478_vm14, %v1528_v47, %v2225_v38  ;;  %v1064_v51 = vsel %vm478_vm14, %v1529_v46, %v2221_v27  ;;  %v1117_v46 = vsel %vm455_vm15, %v1115_v13, %v1116_v15 }
 0x55b   : > { %v1535_v54 = vpack.i.bf16 %v1064_v51, %v1063_v48  ;;  %v1122_v59 = vmin.f32 %v1117_v46, %v2221_v27 }
 0x56f   : > { %v690_v42 = vpop.permute.xlu0 %689 }
 0x570   : > { %v693_v14 = vsel %vm478_vm14, %v690_v42, %v2151_v60 }
 0x571   : > { %707 = vrot.lane.b32.xlu2 %v693_v14, %s1691_s16  ;;  %697 = vrot.lane.b32.xlu0 %v693_v14, %s1690_s15  ;;  %v760_v14 = vmin.f32 %v752_v23, %v758_v25 }
 0x575   : > { %v692_v52 = vpop.permute.xlu1 %691 }
 0x576   : > { %v694_v53 = vsel %vm478_vm14, %v692_v52, %v2179_v32 }
 0x577   : > { %699 = vrot.lane.b32.xlu1 %v694_v53, %s1690_s15 }
 0x579   : > { %1536 = vrot.lane.b32.xlu2 %v1535_v54, %s1691_s16  ;;  %709 = vrot.lane.b32.xlu0 %v694_v53, %s1691_s16  ;;  %v1119_v53 = vsel %vm455_vm15, inf, %v1118_v36 }
 0x57a   : > { %v1121_v5 = vmin.f32 %v1119_v53, %v2225_v38 }
 0x57f   : > { %1531 = vrot.lane.b32.xlu1 %v1535_v54, %s1690_s15  ;;  %v1126_v54 = vsel %vm471_vm0, %v1124_v30, %v1123_v28 }
 0x580   : > { %v1128_v7 = vsel %vm458_vm1, inf, %v1126_v54 }
 0x581   : > { %v1130_v23 = vmin.f32 %v1122_v59, %v1128_v7 }
 0x5cb   : > { %v708_v1 = vpop.permute.xlu2 %707 }
 0x5cc   : > { %v713_v10 = vsel %vm460_vm3, -inf, %v708_v1  ;;  %v765_v61 = vsel %vm460_vm3, inf, %v708_v1 }
 0x5d3   : > { %v1537_v39 = vpop.permute.xlu2 %1536 }
 0x5d4   : > { %v1539_v56 = vunpack.i.h.bf16 %v1537_v39 }
 0x5d6   : > { %v1136_v25 = vsel %vm460_vm3, inf, %v1539_v56 }
 0x5e3   : > { %v698_v3 = vpop.permute.xlu0 %697 }
 0x5e4   : > { %v703_v18 = vsel %vm459_vm2, -inf, %v698_v3  ;;  %v761_v55 = vsel %vm459_vm2, inf, %v698_v3  ;;  %v1538_v3 = vunpack.i.l.bf16 %v1537_v39 }
 0x5e5   : > { %v705_v8 = vmax.f32 %v703_v18, %v2151_v60  ;;  %v763_v9 = vmin.f32 %v761_v55, %v2151_v60  ;;  %v1125_v18 = vsel %vm471_vm0, %v1123_v28, %v1124_v30 }
 0x5e6   : > { %v1129_v53 = vmin.f32 %v1121_v5, %v1125_v18 }
 0x5e7   : > { %v715_v62 = vmax.f32 %v705_v8, %v713_v10  ;;  %v767_v19 = vmin.f32 %v763_v9, %v765_v61 }
 0x5e9   : > { %v2312_v20 = vmin.f32 %v759_v16, %v767_v19  ;;  %v700_v22 = vpop.permute.xlu1 %699  ;;  %v717_v57 = vrot.slane %v715_v62, 7  ;;  %v725_v63 = vrot.slane %v715_v62, 1  ;;  %v1084_v16 = vsel %vm460_vm3, -inf, %v1539_v56 }
 0x5ea   : > { %v704_v31 = vsel %vm459_vm2, -inf, %v700_v22  ;;  %v762_v34 = vsel %vm459_vm2, inf, %v700_v22 }
 0x5eb   : > { %v706_v35 = vmax.f32 %v704_v31, %v2179_v32  ;;  %v764_v37 = vmin.f32 %v762_v34, %v2179_v32  ;;  %v710_v42 = vpop.permute.xlu0 %709  ;;  %771 = vrot.lane.b32.xlu0 %v2312_v20, %s1689_s19 }
 0x5ec   : > { %v714_v47 = vsel %vm460_vm3, -inf, %v710_v42  ;;  %v766_v48 = vsel %vm460_vm3, inf, %v710_v42 }
 0x5ed   : > { %v716_v51 = vmax.f32 %v706_v35, %v714_v47  ;;  %v768_v52 = vmin.f32 %v764_v37, %v766_v48  ;;  %v1083_v35 = vsel %vm460_vm3, -inf, %v1538_v3 }
 0x5ef   : > { %v718_v0 = vrot.slane %v716_v51, 7  ;;  %v726_v1 = vrot.slane %v716_v51, 1  ;;  %v2339_v2 = vmin.f32 %v760_v14, %v768_v52  ;;  %v1135_v52 = vsel %vm460_vm3, inf, %v1538_v3 }
 0x5f1   : > { %v719_v55 = vsel %vm455_vm15, %v717_v57, %v718_v0  ;;  %v720_v8 = vsel %vm455_vm15, %v718_v0, %v717_v57  ;;  %v727_v9 = vsel %vm471_vm0, %v725_v63, %v726_v1  ;;  %v728_v29 = vsel %vm471_vm0, %v726_v1, %v725_v63  ;;  %v1532_v4 = vpop.permute.xlu1 %1531  ;;  %774 = vrot.lane.b32.xlu1 %v2339_v2, %s1689_s19 }
 0x5f2   : > { %v721_v10 = vsel %vm455_vm15, -inf, %v720_v8  ;;  %v724_v61 = vmax.f32 %v719_v55, %v716_v51  ;;  %v730_v13 = vsel %vm458_vm1, -inf, %v728_v29  ;;  %v1534_v15 = vunpack.i.h.bf16 %v1532_v4 }
 0x5f3   : > { %v723_v19 = vmax.f32 %v721_v10, %v715_v62  ;;  %v1533_v22 = vunpack.i.l.bf16 %v1532_v4 }
 0x5f4   : > { %v732_v28 = vmax.f32 %v724_v61, %v730_v13  ;;  %v1074_v30 = vsel %vm459_vm2, -inf, %v1534_v15  ;;  %v1132_v31 = vsel %vm459_vm2, inf, %v1534_v15 }
 0x5f5   : > { %v731_v34 = vmax.f32 %v723_v19, %v727_v9  ;;  %v1076_v36 = vmax.f32 %v1074_v30, %v2221_v27  ;;  %v1134_v39 = vmin.f32 %v1132_v31, %v2221_v27  ;;  %v1073_v62 = vsel %vm459_vm2, -inf, %v1533_v22 }
 0x5f6   : > { %v734_v37 = vsub.f32 %v2030_v58, %v732_v28  ;;  %v1075_v42 = vmax.f32 %v1073_v62, %v2225_v38  ;;  %v1131_v46 = vsel %vm459_vm2, inf, %v1533_v22 }
 0x5f7   : > { %v1086_v47 = vmax.f32 %v1076_v36, %v1084_v16  ;;  %v1138_v14 = vmin.f32 %v1134_v39, %v1136_v25  ;;  %v1133_v48 = vmin.f32 %v1131_v46, %v2225_v38  ;;  %v733_v51 = vsub.f32 %v2004_v26, %v731_v34 }
 0x5f8   : > { %v1085_v54 = vmax.f32 %v1075_v42, %v1083_v35  ;;  %v736_v56 = vmax.f32 %v734_v37, 0.0 }
 0x5f9   : > { %v1088_v57 = vrot.slane %v1086_v47, 7  ;;  %v1096_v59 = vrot.slane %v1086_v47, 1  ;;  %v2382_v58 = vmin.f32 %v1130_v23, %v1138_v14  ;;  %v1137_v63 = vmin.f32 %v1133_v48, %v1135_v52 }
 0x5fa   : > { %v1087_v0 = vrot.slane %v1085_v54, 7  ;;  %v1095_v1 = vrot.slane %v1085_v54, 1  ;;  %v735_v7 = vmax.f32 %v733_v51, 0.0  ;;  %v738_v55 = vmul.f32 %v736_v56, %v2251_v12 }
 0x5fb   : > { %v2385_v8 = vmin.f32 %v1129_v53, %v1137_v63  ;;  %v363_v63 = vpack.c.bf16 %v1830_v45, %v1827_v44 }
 0x5fc   : > { %v1089_v26 = vsel %vm455_vm15, %v1087_v0, %v1088_v57  ;;  %v1090_v3 = vsel %vm455_vm15, %v1088_v57, %v1087_v0  ;;  %v1097_v5 = vsel %vm471_vm0, %v1095_v1, %v1096_v59  ;;  %v1098_v18 = vsel %vm471_vm0, %v1096_v59, %v1095_v1 }
 0x5fd   : > { %v1091_v9 = vsel %vm455_vm15, -inf, %v1090_v3  ;;  %v1094_v29 = vmax.f32 %v1089_v26, %v1086_v47  ;;  %v1100_v4 = vsel %vm458_vm1, -inf, %v1098_v18  ;;  %v1540_v10 = vpack.i.bf16 %v2382_v58, %v2385_v8 }
 0x5fe   : > { %v1093_v61 = vmax.f32 %v1091_v9, %v1085_v54  ;;  %v737_v13 = vmul.f32 %v735_v7, %v2253_v17  ;;  %v740_v15 = vsub.f32 %v736_v56, %v738_v55  ;;  %v361_v0 = vpack.c.bf16 %v1835_v6, %v1835_v6 }
 0x5ff   : > { %v1102_v16 = vmax.f32 %v1094_v29, %v1100_v4  ;;  %1541 = vrot.lane.b32.xlu2 %v1540_v10, %s1689_s19  ;;  %v362_v1 = vpack.c.bf16 %v1839_v11, %v1839_v11  ;;  %v373_v3 = vsel %vm308_vm4, %v363_v63, 0  ;;  %v1692_v29 = vmov 1065369472  }
 0x600   : > { %v1101_v19 = vmax.f32 %v1093_v61, %v1097_v5  ;;  %v739_v23 = vsub.f32 %v735_v7, %v737_v13  ;;  %v742_v22 = vmax.f32 %v740_v15, 0.0  ;;  %v366_v5 = vunpack.c.l.b16 %v361_v0  ;;  %382 = vmatpush.bf16.xpose.msra.mxu0 %v373_v3  ;;  %409 = vmatpush.bf16.xpose.msra.mxu1 %v373_v3 }
 0x601   : > { %v1104_v25 = vsub.f32 %v2076_v41, %v1102_v16  ;;  %v367_v18 = vunpack.c.l.b16 %v362_v1  ;;  %v390_v15 = vunpack.c.l.bf16 %v362_v1  ;;  %v389_v16 = vunpack.c.l.bf16 %v361_v0 }
 0x602   : > { %v741_v28 = vmax.f32 %v739_v23, 0.0  ;;  %v2405_v30 = vadd.f32 %v742_v22, %v2251_v12  ;;  %v1103_v31 = vsub.f32 %v2078_v50, %v1101_v19 }
 0x603   : > { %v1106_v34 = vmax.f32 %v1104_v25, 0.0  ;;  %v368_v9 = vpack.c.b16 %v367_v18, %v366_v5  ;;  %v392_v19 = vmul.f32 %v390_v15, %v390_v15  ;;  %v391_v23 = vmul.f32 %v389_v16, %v389_v16 }
 0x604   : > { %v2409_v36 = vadd.f32 %v741_v28, %v2253_v17  ;;  %v1105_v39 = vmax.f32 %v1103_v31, 0.0 }
 0x605   : > { %v1108_v62 = vmul.f32 %v1106_v34, %v2257_v24  ;;  %v396_v22 = vsel %vm308_vm4, %v392_v19, 0.0  ;;  %v393_v25 = vsel %vm308_vm4, %v391_v23, 0.0 }
 0x606   : > { %v1107_v35 = vmul.f32 %v1105_v39, %v2255_v21 }
 0x607   : > { %v1110_v37 = vsub.f32 %v1106_v34, %v1108_v62  ;;  %1385 = vmatmul.msk.bf16.vlgmr.msra.gmra.mxu0 %vm308_vm4, %v368_v9  ;;  %1386 = vmatmul.msk.bf16.vlgmr.msra.gmra.mxu1 %vm308_vm4, %v1692_v29 }
 0x608   : > { %v1109_v42 = vsub.f32 %v1105_v39, %v1107_v35 }
 0x609   : > { %v1112_v46 = vmax.f32 %v1110_v37, 0.0 }
 0x60a   : > { %v1111_v47 = vmax.f32 %v1109_v42, 0.0 }
 0x60b   : > { %v2414_v41 = vadd.f32 %v1112_v46, %v2257_v24 }
 0x60c   : > { %v2417_v12 = vadd.f32 %v1111_v47, %v2255_v21  ;;  %v321_v47 = vmul.f32 %v1835_v6, %v1835_v6 }
 0x659   : > { %v1542_v50 = vpop.permute.xlu2 %1541 }
 0x65a   : > { %v1544_v14 = vunpack.i.h.bf16 %v1542_v50  ;;  %v1543_v48 = vunpack.i.l.bf16 %v1542_v50  ;;  %v322_v50 = vmul.f32 %v1839_v11, %v1839_v11 }
 0x65c   : > { %v1143_v17 = vsel %vm478_vm14, %v1543_v48, %v2385_v8  ;;  %v1146_v51 = vsel %vm478_vm14, %v1544_v14, %v2382_v58 }
 0x65d   : > { %v1545_v52 = vpack.i.bf16 %v1146_v51, %v1143_v17  ;;  %v772_v53 = vpop.permute.xlu0 %771 }
 0x65e   : > { %v773_v54 = vsel %vm478_vm14, %v772_v53, %v2312_v20  ;;  %v324_v53 = vadd.f32 %v1830_v45, %v322_v50 }
 0x65f   : > { %1546 = vrot.lane.b32.xlu2 %v1545_v52, %s1689_s19  ;;  %777 = vrot.lane.b32.xlu0 %v773_v54, %s1689_s19  ;;  %v323_v52 = vadd.f32 %v1827_v44, %v321_v47 }
 0x663   : > { %v775_v21 = vpop.permute.xlu1 %774 }
 0x664   : > { %v776_v24 = vsel %vm478_vm14, %v775_v21, %v2339_v2 }
 0x665   : > { %779 = vrot.lane.b32.xlu1 %v776_v24, %s1689_s19  ;;  %v325_v24 = vsel %vm308_vm4, %v323_v52, 0.0 }
 0x6b9   : > { %v1547_v56 = vpop.permute.xlu2 %1546 }
 0x6ba   : > { %v1549_v57 = vunpack.i.h.bf16 %v1547_v56  ;;  %v1548_v59 = vunpack.i.l.bf16 %v1547_v56  ;;  %v326_v56 = vsel %vm308_vm4, %v324_v53, 0.0 }
 0x6bb   : > { %v327_v63 = vadd.f32 %v326_v56, %v325_v24 }
 0x6bc   : > { %v1151_v7 = vsel %vm478_vm14, %v1548_v59, %v2385_v8  ;;  %v1152_v55 = vsel %vm478_vm14, %v1549_v57, %v2382_v58 }
 0x6bd   : > { %v1550_v26 = vpack.i.bf16 %v1152_v55, %v1151_v7 }
 0x6bf   : > { %1551 = vrot.lane.b32.xlu1 %v1550_v26, %s1690_s15 }
 0x6d1   : > { %v778_v4 = vpop.permute.xlu0 %777 }
 0x6d2   : > { %v781_v10 = vsel %vm478_vm14, %v778_v4, %v2312_v20 }
 0x6d3   : > { %795 = vrot.lane.b32.xlu2 %v781_v10, %s1691_s16  ;;  %785 = vrot.lane.b32.xlu0 %v781_v10, %s1690_s15 }
 0x6d7   : > { %v780_v61 = vpop.permute.xlu1 %779 }
 0x6d8   : > { %v782_v13 = vsel %vm478_vm14, %v780_v61, %v2339_v2  ;;  %vm1276_vm14 = vcmp.eq.s32.totalorder %v1868_v33, 7 }
 0x6d9   : > { %787 = vrot.lane.b32.xlu1 %v782_v13, %s1690_s15 }
 0x6db   : > { %1556 = vrot.lane.b32.xlu2 %v1550_v26, %s1691_s16  ;;  %797 = vrot.lane.b32.xlu0 %v782_v13, %s1691_s16 }
 0x703   : > { %397 = vadd.xlane.f32.xlu1 %v396_v22 }
 0x705   : > { %394 = vadd.xlane.f32.xlu0 %v393_v25  ;;  %v2492_v25 = vpop.f32.mrf.mxu1 }
 0x70b   : > { %328 = vadd.xlane.f32.xlu1 %v327_v63 }
 0x72d   : > { %v796_v28 = vpop.permute.xlu2 %795 }
 0x731   : > { %v1552_v31 = vpop.permute.xlu1 %1551 }
 0x732   : > { %v1554_v34 = vunpack.i.h.bf16 %v1552_v31  ;;  %v1553_v39 = vunpack.i.l.bf16 %v1552_v31  ;;  %v1584_v31 = vld [vmem:[%s1818_s24] sm:$0xff] }
 0x733   : > { %vm298_vm5 = vcmp.ne.s32.totalorder %v1584_v31, 255 }
 0x734   : > { %v1162_v62 = vsel %vm459_vm2, -inf, %v1554_v34  ;;  %v1161_v35 = vsel %vm459_vm2, -inf, %v1553_v39  ;;  %v1585_v34 = vld [vmem:[%s1818_s24 + $0x8] sm:$0xff]  ;;  %v801_v39 = vsel %vm460_vm3, -inf, %v796_v28 }
 0x735   : > { %v1557_v37 = vpop.permute.xlu2 %1556  ;;  %v1164_v14 = vmax.f32 %v1162_v62, %v2382_v58  ;;  %v1163_v48 = vmax.f32 %v1161_v35, %v2385_v8  ;;  %vm299_vm6 = vcmp.ne.s32.totalorder %v1585_v34, 255  ;;  %v1383_v62 = vsel %vm298_vm5, 1.0, %v1688_v43 }
 0x736   : > { %v1559_v42 = vunpack.i.h.bf16 %v1557_v37  ;;  %v1558_v46 = vunpack.i.l.bf16 %v1557_v37 }
 0x738   : > { %v1172_v17 = vsel %vm460_vm3, -inf, %v1559_v42  ;;  %v1171_v51 = vsel %vm460_vm3, -inf, %v1558_v46 }
 0x739   : > { %v1173_v54 = vmax.f32 %v1163_v48, %v1171_v51  ;;  %v1174_v21 = vmax.f32 %v1164_v14, %v1172_v17 }
 0x73b   : > { %v1175_v57 = vrot.slane %v1173_v54, 7  ;;  %v1176_v58 = vrot.slane %v1174_v21, 7  ;;  %v1183_v59 = vrot.slane %v1173_v54, 1  ;;  %v1184_v8 = vrot.slane %v1174_v21, 1 }
 0x73d   : > { %v1177_v0 = vsel %vm455_vm15, %v1175_v57, %v1176_v58  ;;  %v1178_v1 = vsel %vm455_vm15, %v1176_v58, %v1175_v57  ;;  %v1186_v7 = vsel %vm471_vm0, %v1184_v8, %v1183_v59  ;;  %v1185_v18 = vsel %vm471_vm0, %v1183_v59, %v1184_v8  ;;  %v413_v58 = vpop.f32.mrf.mxu1 }
 0x73e   : > { %v1179_v55 = vsel %vm455_vm15, -inf, %v1178_v1  ;;  %v1182_v26 = vmax.f32 %v1177_v0, %v1174_v21  ;;  %v1188_v3 = vsel %vm458_vm1, -inf, %v1186_v7 }
 0x73f   : > { %v1181_v5 = vmax.f32 %v1179_v55, %v1173_v54 }
 0x740   : > { %v1190_v9 = vmax.f32 %v1182_v26, %v1188_v3 }
 0x741   : > { %v1189_v29 = vmax.f32 %v1181_v5, %v1185_v18 }
 0x742   : > { %v1192_v4 = vsub.f32 %v2221_v27, %v1190_v9  ;;  %v304_v27 = vmul.f32 %v1827_v44, %v1835_v6 }
 0x743   : > { %v1191_v10 = vsub.f32 %v2225_v38, %v1189_v29  ;;  %v305_v38 = vmul.f32 %v1830_v45, %v1839_v11 }
 0x744   : > { %v1194_v61 = vmax.f32 %v1192_v4, 0.0  ;;  %v306_v35 = vmul.f32 %v1383_v62, %v304_v27 }
 0x745   : > { %v786_v13 = vpop.permute.xlu0 %785  ;;  %v1193_v15 = vmax.f32 %v1191_v10, 0.0 }
 0x746   : > { %v791_v16 = vsel %vm459_vm2, -inf, %v786_v13  ;;  %v1196_v19 = vmul.f32 %v1194_v61, %v2414_v41  ;;  %v309_v48 = vsel %vm308_vm4, %v306_v35, 0.0 }
 0x747   : > { %v793_v23 = vmax.f32 %v791_v16, %v2312_v20  ;;  %v1195_v22 = vmul.f32 %v1193_v15, %v2417_v12  ;;  %v1384_v20 = vsel %vm299_vm6, 1.0, %v1688_v43 }
 0x748   : > { %v1198_v42 = vsub.f32 %v1194_v61, %v1196_v19  ;;  %v307_v50 = vmul.f32 %v1384_v20, %v305_v38 }
 0x749   : > { %v1197_v37 = vsub.f32 %v1193_v15, %v1195_v22  ;;  %v803_v46 = vmax.f32 %v793_v23, %v801_v39 }
 0x74a   : > { %v1200_v51 = vmax.f32 %v1198_v42, 0.0  ;;  %v310_v53 = vsel %vm308_vm4, %v307_v50, 0.0 }
 0x74b   : > { %v788_v47 = vpop.permute.xlu1 %787  ;;  %v1199_v17 = vmax.f32 %v1197_v37, 0.0  ;;  %v311_v54 = vadd.f32 %v310_v53, %v309_v48  ;;  %v805_v56 = vrot.slane %v803_v46, 7  ;;  %v813_v0 = vrot.slane %v803_v46, 1 }
 0x74c   : > { %v792_v14 = vsel %vm459_vm2, -inf, %v788_v47  ;;  %v1202_v24 = vadd.f32 %v1200_v51, %v2414_v41  ;;  %v339_v47 = vsub.f32 1.0, %v1835_v6 }
 0x74d   : > { %v794_v52 = vmax.f32 %v792_v14, %v2339_v2  ;;  %v798_v28 = vpop.permute.xlu0 %797  ;;  %v1201_v21 = vadd.f32 %v1199_v17, %v2417_v12  ;;  %312 = vadd.xlane.f32.xlu2 %v311_v54  ;;  %v415_v17 = vperm.slane %v2492_v25, 0 }
 0x74e   : > { %v802_v43 = vsel %vm460_vm3, -inf, %v798_v28  ;;  %v1244_v8 = vsel %vm308_vm4, %v1202_v24, 0.0  ;;  %v1230_v63 = vmul.f32 %v1202_v24, %v1839_v11  ;;  %v341_v14 = vadd.f32 1e-06, %v339_v47 }
 0x74f   : > { %v804_v57 = vmax.f32 %v794_v52, %v802_v43  ;;  %v1243_v59 = vsel %vm308_vm4, %v1201_v21, 0.0  ;;  %v1229_v2 = vmul.f32 %v1201_v21, %v1835_v6  ;;  %v337_v6 = vsub.f32 1.0, %v1827_v44 }
 0x750   : > { %v2517_v7 = vadd.f32 %v1244_v8, %v1243_v59  ;;  %v1232_v41 = vsel %vm308_vm4, %v1230_v63, 0.0  ;;  %1580 = vlog2.f32 %v341_v14 }
 0x751   : > { %v806_v49 = vrot.slane %v804_v57, 7  ;;  %v814_v1 = vrot.slane %v804_v57, 1  ;;  %v1231_v12 = vsel %vm308_vm4, %v1229_v2, 0.0 }
 0x752   : > { %v2531_v29 = vadd.f32 %v1232_v41, %v1231_v12 }
 0x753   : > { %v807_v55 = vsel %vm455_vm15, %v805_v56, %v806_v49  ;;  %v808_v26 = vsel %vm455_vm15, %v806_v49, %v805_v56  ;;  %v816_v3 = vsel %vm471_vm0, %v814_v1, %v813_v0  ;;  %v815_v10 = vsel %vm471_vm0, %v813_v0, %v814_v1 }
 0x754   : > { %v809_v5 = vsel %vm455_vm15, -inf, %v808_v26  ;;  %v812_v18 = vmax.f32 %v807_v55, %v804_v57  ;;  %v818_v9 = vsel %vm458_vm1, -inf, %v816_v3  ;;  %v338_v56 = vsub.f32 1.0, %v1830_v45 }
 0x755   : > { %v811_v4 = vmax.f32 %v809_v5, %v803_v46 }
 0x756   : > { %v820_v61 = vmax.f32 %v812_v18, %v818_v9  ;;  %v1581_v52 = vpop.eup %1580 }
 0x757   : > { %v819_v13 = vmax.f32 %v811_v4, %v815_v10  ;;  %v344_v58 = vmul.f32 0.6931472, %v1581_v52 }
 0x758   : > { %v822_v15 = vsub.f32 %v2179_v32, %v820_v61 }
 0x759   : > { %v821_v16 = vsub.f32 %v2151_v60, %v819_v13  ;;  %v347_v0 = vmul.f32 %v344_v58, %v337_v6 }
 0x75a   : > { %v824_v19 = vmax.f32 %v822_v15, 0.0 }
 0x75b   : > { %v823_v23 = vmax.f32 %v821_v16, 0.0 }
 0x75c   : > { %v826_v22 = vmul.f32 %v824_v19, %v2405_v30 }
 0x75d   : > { %v825_v31 = vmul.f32 %v823_v23, %v2409_v36 }
 0x75e   : > { %v828_v40 = vsub.f32 %v824_v19, %v826_v22 }
 0x75f   : > { %v827_v34 = vsub.f32 %v823_v23, %v825_v31 }
 0x760   : > { %v830_v27 = vmax.f32 %v828_v40, 0.0 }
 0x761   : > { %v829_v38 = vmax.f32 %v827_v34, 0.0 }
 0x762   : > { %v832_v39 = vadd.f32 %v830_v27, %v2405_v30  ;;  %v340_v30 = vsub.f32 1.0, %v1839_v11 }
 0x763   : > { %v831_v62 = vadd.f32 %v829_v38, %v2409_v36  ;;  %v384_v36 = vpop.f32.mrf.mxu0 }
 0x764   : > { %v1218_v20 = vsel %vm308_vm4, %v832_v39, 0.0  ;;  %v1204_v32 = vmul.f32 %v1830_v45, %v832_v39  ;;  %v342_v48 = vadd.f32 1e-06, %v340_v30  ;;  %v418_v21 = vmul.f32 2.0, %v384_v36 }
 0x765   : > { %v1217_v60 = vsel %vm308_vm4, %v831_v62, 0.0  ;;  %v1203_v35 = vmul.f32 %v1827_v44, %v831_v62  ;;  %v349_v44 = vsel %vm308_vm4, %v347_v0, 0.0 }
 0x766   : > { %v1219_v37 = vadd.f32 %v1218_v20, %v1217_v60  ;;  %v1206_v42 = vsel %vm308_vm4, %v1204_v32, 0.0  ;;  %1582 = vlog2.f32 %v342_v48 }
 0x767   : > { %v1205_v46 = vsel %vm308_vm4, %v1203_v35, 0.0 }
 0x768   : > { %1220 = vadd.xlane.f32.xlu1 %v1219_v37  ;;  %v1207_v50 = vadd.f32 %v1206_v42, %v1205_v46 }
 0x76b   : > { %v386_v51 = vpop.f32.mrf.mxu0 }
 0x76c   : > { %v1583_v28 = vpop.eup %1582  ;;  %v419_v43 = vmul.f32 2.0, %v386_v51 }
 0x76d   : > { %v346_v59 = vmul.f32 0.6931472, %v1583_v28 }
 0x76f   : > { %v348_v49 = vmul.f32 %v346_v59, %v338_v56 }
 0x771   : > { %v350_v45 = vsel %vm308_vm4, %v348_v49, 0.0 }
 0x772   : > { %v351_v26 = vadd.f32 %v350_v45, %v349_v44 }
 0x776   : > { %v398_v53 = vpop.xlane.xlu1 %397 }
 0x777   : > { %v417_v54 = vadd.f32 %v415_v17, %v398_v53 }
 0x778   : > { %v395_v24 = vpop.xlane.xlu0 %394 }
 0x779   : > { %v421_v11 = vsub.f32 %v417_v54, %v419_v43  ;;  %v416_v57 = vadd.f32 %v415_v17, %v395_v24 }
 0x77b   : > { %v420_v8 = vsub.f32 %v416_v57, %v418_v21  ;;  %v423_v2 = vmax.f32 %v421_v11, 0.0 }
 0x77d   : > { %v427_v25 = vsel %vm308_vm4, %v423_v2, inf  ;;  %v422_v63 = vmax.f32 %v420_v8, 0.0 }
 0x77e   : > { %428 = vmin.xlane.f32.xlu0 %v427_v25  ;;  %v329_v61 = vpop.xlane.xlu1 %328 }
 0x77f   : > { %v424_v1 = vsel %vm308_vm4, %v422_v63, inf  ;;  %v330_v13 = vrot.slane %v329_v61, 4 }
 0x780   : > { %v438_v12 = vmin.f32 %v424_v1, %v427_v25  ;;  %425 = vmin.xlane.f32.xlu2 %v424_v1 }
 0x781   : > { %v331_v16 = vadd.f32 %v330_v13, %v329_v61 }
 0x782   : > { %v439_v41 = vrot.slane %v438_v12, 4 }
 0x783   : > { %v332_v23 = vrot.slane %v331_v16, 2 }
 0x784   : > { %v440_v55 = vmin.f32 %v438_v12, %v439_v41 }
 0x785   : > { %v333_v40 = vadd.f32 %v332_v23, %v331_v16 }
 0x786   : > { %v441_v3 = vrot.slane %v440_v55, 2  ;;  %1208 = vadd.xlane.f32.xlu0 %v1207_v50 }
 0x787   : > { %v334_v27 = vrot.slane %v333_v40, 1 }
 0x788   : > { %352 = vadd.xlane.f32.xlu2 %v351_v26  ;;  %v442_v5 = vmin.f32 %v440_v55, %v441_v3 }
 0x789   : > { %v335_v39 = vadd.f32 %v334_v27, %v333_v40 }
 0x78a   : > { %v443_v18 = vrot.slane %v442_v5, 1 }
 0x78c   : > { %v444_v9 = vmin.f32 %v442_v5, %v443_v18 }
 0x78e   : > { %1246 = vadd.xlane.f32.xlu0 %v2517_v7  ;;  %v445_v4 = vsel %vm308_vm4, %v444_v9, -inf }
 0x78f   : > { %446 = vmax.xlane.f32.xlu1 %v445_v4 }
 0x790   : > { %1234 = vadd.xlane.f32.xlu2 %v2531_v29 }
 0x7c0   : > { %v313_v10 = vpop.xlane.xlu2 %312 }
 0x7c1   : > { %v314_v15 = vrot.slane %v313_v10, 4 }
 0x7c3   : > { %v315_v19 = vadd.f32 %v314_v15, %v313_v10 }
 0x7c5   : > { %v316_v22 = vrot.slane %v315_v19, 2 }
 0x7c7   : > { %v317_v31 = vadd.f32 %v316_v22, %v315_v19 }
 0x7c9   : > { %v318_v34 = vrot.slane %v317_v31, 1 }
 0x7cb   : > { %v319_v38 = vadd.f32 %v318_v34, %v317_v31 }
 0x7cd   : > { %1391 = vpush %v319_v38 }
 0x7ce   : > { %1393 = vpush %v335_v39 }
 0x7db   : > { %v1221_v62 = vpop.xlane.xlu1 %1220 }
 0x7dc   : > { %v1222_v32 = vrot.slane %v1221_v62, 4 }
 0x7de   : > { %v1223_v42 = vadd.f32 %v1222_v32, %v1221_v62 }
 0x7e0   : > { %v1224_v14 = vrot.slane %v1223_v42, 2 }
 0x7e2   : > { %v1225_v21 = vadd.f32 %v1224_v14, %v1223_v42 }
 0x7e4   : > { %v1226_v25 = vrot.slane %v1225_v21, 1 }
 0x7e6   : > { %v1227_v45 = vadd.f32 %v1226_v25, %v1225_v21 }
 0x7f1   : > { %v429_v7 = vpop.xlane.xlu0 %428 }
 0x7f3   : > { %v426_v20 = vpop.xlane.xlu2 %425 }
 0x7f4   : > { %v430_v29 = vmax.f32 %v426_v20, %v429_v7 }
 0x7f6   : > { %v431_v60 = vrot.slane %v430_v29, 4 }
 0x7f8   : > { %v432_v35 = vmax.f32 %v430_v29, %v431_v60 }
 0x7f9   : > { %v1209_v37 = vpop.xlane.xlu0 %1208 }
 0x7fa   : > { %v1210_v46 = vrot.slane %v1209_v37, 4  ;;  %v433_v47 = vrot.slane %v432_v35, 2 }
 0x7fb   : > { %v353_v50 = vpop.xlane.xlu2 %352 }
 0x7fc   : > { %v1211_v30 = vadd.f32 %v1210_v46, %v1209_v37  ;;  %v354_v36 = vrot.slane %v353_v50, 4  ;;  %v434_v51 = vmax.f32 %v432_v35, %v433_v47 }
 0x7fe   : > { %v1212_v48 = vrot.slane %v1211_v30, 2  ;;  %v355_v17 = vadd.f32 %v354_v36, %v353_v50  ;;  %v435_v6 = vrot.slane %v434_v51, 1  ;;  %s1392_s22 = spop %1391 }
 0x7ff   : > { %v1256_v5 = vstv %s1392_s22  ;;  %s1394_s25 = spop %1393 }
 0x800   : > { %v356_v52 = vrot.slane %v355_v17, 2  ;;  %v1213_v53 = vadd.f32 %v1212_v48, %v1211_v30  ;;  %v436_v63 = vmax.f32 %v434_v51, %v435_v6  ;;  %v1257_v18 = vsel %vm1255_vm7, %v1256_v5, 0.0 }
 0x801   : > { %v1247_v28 = vpop.xlane.xlu0 %1246  ;;  %v1259_v9 = vstv %s1394_s25 }
 0x802   : > { %v1248_v43 = vrot.slane %v1247_v28, 4  ;;  %v357_v54 = vadd.f32 %v356_v52, %v355_v17  ;;  %v1214_v58 = vrot.slane %v1213_v53, 1  ;;  %v447_v1 = vpop.xlane.xlu1 %446  ;;  %v1260_v4 = vsel %vm1258_vm8, %v1259_v9, %v1257_v18 }
 0x803   : > { %v1235_v24 = vpop.xlane.xlu2 %1234 }
 0x804   : > { %v1249_v56 = vadd.f32 %v1248_v43, %v1247_v28  ;;  %v1236_v11 = vrot.slane %v1235_v24, 4  ;;  %v358_v57 = vrot.slane %v357_v54, 1  ;;  %v1215_v12 = vadd.f32 %v1214_v58, %v1213_v53 }
 0x806   : > { %v1250_v59 = vrot.slane %v1249_v56, 2  ;;  %v1237_v8 = vadd.f32 %v1236_v11, %v1235_v24  ;;  %v359_v2 = vadd.f32 %v358_v57, %v357_v54 }
 0x808   : > { %v1251_v0 = vadd.f32 %v1250_v59, %v1249_v56  ;;  %v1238_v49 = vrot.slane %v1237_v8, 2  ;;  %1395 = vpush %v359_v2 }
 0x809   : > { %1397 = vpush %v436_v63 }
 0x80a   : > { %v1239_v44 = vadd.f32 %v1238_v49, %v1237_v8  ;;  %1399 = vpush %v447_v1  ;;  %v1252_v41 = vrot.slane %v1251_v0, 1 }
 0x80b   : > { %1401 = vpush %v1215_v12 }
 0x80c   : > { %1403 = vpush %v1227_v45  ;;  %v1240_v55 = vrot.slane %v1239_v44, 1  ;;  %v1253_v3 = vadd.f32 %v1252_v41, %v1251_v0 }
 0x80e   : > { %v1241_v26 = vadd.f32 %v1240_v55, %v1239_v44 }
 0x810   : > { %1405 = vpush %v1241_v26 }
 0x811   : > { %1407 = vpush %v1253_v3 }
 0x839   : > { %s1396_s26 = spop %1395 }
 0x83a   : > { %v1262_v10 = vstv %s1396_s26  ;;  %s1398_s3 = spop %1397 }
 0x83b   : > { %v1263_v61 = vsel %vm1261_vm9, %v1262_v10, %v1260_v4  ;;  %s1400_s4 = spop %1399 }
 0x83c   : > { %s449_s5 = smax.f32 %s1400_s4, %s1398_s3  ;;  %s1402_s27 = spop %1401 }
 0x83d   : > { %v1265_v13 = vstv %s449_s5  ;;  %v1268_v16 = vstv %s1402_s27  ;;  %s1404_s28 = spop %1403 }
 0x83e   : > { %v1266_v15 = vsel %vm1264_vm10, %v1265_v13, %v1263_v61  ;;  %v1271_v23 = vstv %s1404_s28 }
 0x83f   : > { %v1269_v19 = vsel %vm1267_vm11, %v1268_v16, %v1266_v15 }
 0x840   : > { %v1272_v22 = vsel %vm1270_vm12, %v1271_v23, %v1269_v19 }
 0x841   : > { %s1406_s30 = spop %1405 }
 0x842   : > { %v1274_v31 = vstv %s1406_s30  ;;  %s1408_s20 = spop %1407 }
 0x843   : > { %v1275_v40 = vsel %vm1273_vm13, %v1274_v31, %v1272_v22  ;;  %v1277_v34 = vstv %s1408_s20 }
 0x844   : > { %v1278_v27 = vsel %vm1276_vm14, %v1277_v34, %v1275_v40 }
 0x845   : > { %1279 = vst [vmem:[%s205_s8] sm:$0xff] %v1278_v27 }
 0x846 PF: > { %p15_p8 = scmp.ge.s32.totalorder %s1730_s14, 4   ;;  %s2592_s9 = smov %s1676_s10 }
 0x847   : > { %s2593_s10 = smov %s1680_s11  ;;  %s2594_s11 = smov %s1740_s17 }
 0x848   : > { %s2595_s12 = smov %s1730_s14  ;;  %17 = sbr.rel (!%p15_p8) target bundleno = 5 (0x5), region = 81 }
 0x84d   :  { %1299 = vsyncpa [#allocation3], 1 }
 0x84e   :  { %1301 = vsyncpa [#allocation3 + $0x1], 1 }
 0x84f   :  { %1302 = vsyncpa [#allocation5], 1 }
 0x850   :  { %1304 = vsyncpa [#allocation5 + $0x1], 1 }

</bundles_post_ra>
